<compile_context>
chip_gen: v6e
topology: v6e:2x2x1
jax: 0.10.0
libtpu: 0.0.40
codegen_flags: <defaults>
</compile_context>

<pallas_src>
import jax
import jax.numpy as jnp
from jax import lax
from jax.experimental import pallas as pl
from jax.experimental.pallas import tpu as pltpu


def lstm_model_kernel(x_ref, emb_ref, wh_ref, bh_ref, wc_ref, bc_ref,
                      wih_ref, whh_ref, b_ref, wfc_ref, bfc_ref,
                      out_ref, h_ref, c_ref, x0_ref, hid_ref):
    T, Bp, Vp = out_ref.shape
    L = wih_ref.shape[0]
    H = whh_ref.shape[1]

    # ---- init_hidden: h0 = imf2lstm_h(x), c0 = imf2lstm_c(x) --------------
    x = x_ref[...]                                                  # [Bp, In]
    h0 = jnp.dot(x, wh_ref[...], preferred_element_type=jnp.float32) + bh_ref[...]
    c0 = jnp.dot(x, wc_ref[...], preferred_element_type=jnp.float32) + bc_ref[...]

    # ---- layer-0 input->gates projection, hoisted out of the time loop ----
    # [T*Bp, E] @ [E, 4H] -> [T*Bp, 4H]; layer-0 bias folded in once.
    x0_ref[...] = (jnp.dot(emb_ref[...], wih_ref[0],
                           preferred_element_type=jnp.float32) + b_ref[0])

    def lstm_cell(z, c_prev):
        i_g = jax.nn.sigmoid(z[:, 0 * H:1 * H])
        f_g = jax.nn.sigmoid(z[:, 1 * H:2 * H])
        g_g = jnp.tanh(z[:, 2 * H:3 * H])
        o_g = jax.nn.sigmoid(z[:, 3 * H:4 * H])
        c_new = f_g * c_prev + i_g * g_g
        h_new = o_g * jnp.tanh(c_new)
        return h_new, c_new

    def step(t, carry):
        hs, cs = carry                                    # tuples of [Bp, H]
        row = pl.multiple_of(t * Bp, Bp)
        new_hs, new_cs = [], []
        inp = None
        for l in range(L):
            if l == 0:
                # teacher-forced input already projected; only recurrent matmul left
                z = x0_ref[pl.ds(row, Bp), :] + jnp.dot(
                    hs[0], whh_ref[0], preferred_element_type=jnp.float32)
            else:
                z = (jnp.dot(inp, wih_ref[l], preferred_element_type=jnp.float32)
                     + jnp.dot(hs[l], whh_ref[l], preferred_element_type=jnp.float32)
                     + b_ref[l])
            h_new, c_new = lstm_cell(z, cs[l])
            new_hs.append(h_new)
            new_cs.append(c_new)
            inp = h_new
        # c = c_0 * 0.5 + c * 0.5   (every layer, every step)
        new_cs = [0.5 * c0 + 0.5 * c_l for c_l in new_cs]
        hid_ref[pl.ds(row, Bp), :] = new_hs[-1]           # last-layer output
        return tuple(new_hs), tuple(new_cs)

    init = (tuple(h0 for _ in range(L)), tuple(c0 for _ in range(L)))
    hs, cs = lax.fori_loop(0, T, step, init, unroll=True)

    for l in range(L):
        h_ref[l] = hs[l]
        c_ref[l] = cs[l]

    # ---- LM_FC + nn.Softmax(dim=1): softmax over the SEQUENCE axis --------
    logits = (jnp.dot(hid_ref[...], wfc_ref[...],
                      preferred_element_type=jnp.float32)
              + bfc_ref[...]).reshape(T, Bp, Vp)
    m = jnp.max(logits, axis=0, keepdims=True)
    e = jnp.exp(logits - m)
    out_ref[...] = e / jnp.sum(e, axis=0, keepdims=True)   # lane-dense [T,Bp,Vp]


def lstm_model_forward(x, y, p):
    # Glue: embedding lookup (gather) stays in plain JAX.
    emb = p["embedding"][y]                                  # [B, T, E]
    B, T = y.shape
    In = x.shape[1]
    L, _, H, E = p["wih"].shape
    V = p["wfc"].shape[0]

    Bp = ((B + 7) // 8) * 8          # sublane-pad the batch
    Vp = ((V + 127) // 128) * 128    # lane-pad the vocab -> lane-dense stores

    # Layout plumbing, done once outside the kernel:
    # fused, pre-transposed gate weights [L, *, 4H] and pre-summed biases.
    wih_f = jnp.transpose(p["wih"].reshape(L, 4 * H, E), (0, 2, 1))   # [L, E, 4H]
    whh_f = jnp.transpose(p["whh"].reshape(L, 4 * H, H), (0, 2, 1))   # [L, H, 4H]
    b_f = (p["bih"] + p["bhh"]).reshape(L, 1, 4 * H)                  # [L, 1, 4H]
    wh_t = p["wh"].T                                                  # [In, H]
    wc_t = p["wc"].T
    wfc_p = jnp.zeros((H, Vp), jnp.float32).at[:, :V].set(p["wfc"].T)
    bfc_p = jnp.zeros((1, Vp), jnp.float32).at[:, :V].set(p["bfc"])

    x_p = jnp.zeros((Bp, In), jnp.float32).at[:B].set(x)
    emb_t = jnp.zeros((T, Bp, E), jnp.float32).at[:, :B, :].set(
        jnp.transpose(emb, (1, 0, 2)))
    emb_2d = emb_t.reshape(T * Bp, E)                        # time-major rows

    vmem = pl.BlockSpec(memory_space=pltpu.MemorySpace.VMEM)
    out_tbv, h_out, c_out = pl.pallas_call(
        lstm_model_kernel,
        out_shape=(
            jax.ShapeDtypeStruct((T, Bp, Vp), jnp.float32),
            jax.ShapeDtypeStruct((L, Bp, H), jnp.float32),
            jax.ShapeDtypeStruct((L, Bp, H), jnp.float32),
        ),
        in_specs=[vmem] * 11,
        out_specs=(vmem, vmem, vmem),
        scratch_shapes=[
            pltpu.VMEM((T * Bp, 4 * H), jnp.float32),   # hoisted layer-0 gate proj
            pltpu.VMEM((T * Bp, H), jnp.float32),       # per-step last-layer h
        ],
    )(x_p, emb_2d, wh_t, p["bh"], wc_t, p["bc"],
      wih_f, whh_f, b_f, wfc_p, bfc_p)

    out = jnp.transpose(out_tbv[:, :B, :V], (1, 0, 2))       # [B, T, V]
    return out, h_out[:, :B, :], c_out[:, :B, :]


def init_params(key, input_dim, vocab, emb_dim, hidden, n_layers):
    # Stacked per-layer LSTM weights require layer-0 input size == hidden.
    assert emb_dim == hidden
    ks = jax.random.split(key, 12)
    s = 0.1
    return {
        "embedding": jax.random.normal(ks[0], (vocab, emb_dim), jnp.float32) * s,
        "wh": jax.random.normal(ks[1], (hidden, input_dim), jnp.float32) * s,
        "bh": jax.random.normal(ks[2], (1, hidden), jnp.float32) * s,
        "wc": jax.random.normal(ks[3], (hidden, input_dim), jnp.float32) * s,
        "bc": jax.random.normal(ks[4], (1, hidden), jnp.float32) * s,
        "wih": jax.random.normal(ks[5], (n_layers, 4, hidden, emb_dim), jnp.float32) * s,
        "whh": jax.random.normal(ks[6], (n_layers, 4, hidden, hidden), jnp.float32) * s,
        "bih": jax.random.normal(ks[7], (n_layers, 4, hidden), jnp.float32) * s,
        "bhh": jax.random.normal(ks[8], (n_layers, 4, hidden), jnp.float32) * s,
        "wfc": jax.random.normal(ks[9], (vocab, hidden), jnp.float32) * s,
        "bfc": jax.random.normal(ks[10], (1, vocab), jnp.float32) * s,
    }


def reference_forward(x, y, p):
    """Pure-JAX mirror of the PyTorch forward (train=True)."""
    emb = p["embedding"][y]
    h0 = x @ p["wh"].T + p["bh"]
    c0 = x @ p["wc"].T + p["bc"]
    L = p["wih"].shape[0]
    hs = [h0 for _ in range(L)]
    cs = [c0 for _ in range(L)]
    outs = []
    for t in range(y.shape[1]):
        inp = emb[:, t, :]
        for l in range(L):
            def g(i):
                return (inp @ p["wih"][l, i].T + hs[l] @ p["whh"][l, i].T
                        + p["bih"][l, i] + p["bhh"][l, i])
            ig = jax.nn.sigmoid(g(0))
            fg = jax.nn.sigmoid(g(1))
            gg = jnp.tanh(g(2))
            og = jax.nn.sigmoid(g(3))
            cs[l] = fg * cs[l] + ig * gg
            hs[l] = og * jnp.tanh(cs[l])
            inp = hs[l]
        cs = [0.5 * c0 + 0.5 * c for c in cs]
        outs.append(hs[-1])
    hid = jnp.stack(outs, axis=1)
    logits = hid @ p["wfc"].T + p["bfc"]
    out = jax.nn.softmax(logits, axis=1)
    return out, jnp.stack(hs, axis=0), jnp.stack(cs, axis=0)


if __name__ == "__main__":
    B, T = 2, 8
    input_dim, hidden, emb_dim, vocab, n_layers = 16, 32, 32, 64, 2

    key = jax.random.PRNGKey(0)
    kx, ky, kp = jax.random.split(key, 3)
    params = init_params(kp, input_dim, vocab, emb_dim, hidden, n_layers)
    x = jax.random.normal(kx, (B, input_dim), jnp.float32)
    y = jax.random.randint(ky, (B, T), 0, vocab, dtype=jnp.int32)

    out, h, c = lstm_model_forward(x, y, params)
    jax.block_until_ready((out, h, c))

    ref_out, ref_h, ref_c = reference_forward(x, y, params)
    assert out.shape == (B, T, vocab) and h.shape == (n_layers, B, hidden)
    assert jnp.allclose(out, ref_out, atol=1e-2, rtol=1e-2)
    assert jnp.allclose(h, ref_h, atol=1e-2, rtol=1e-2)
    assert jnp.allclose(c, ref_c, atol=1e-2, rtol=1e-2)

    print("KERNEL_OK")
</pallas_src>

<mosaic_0001>
module attributes {stable_mosaic.version = 11 : i64} {
  func.func @lstm_model_kernel(%arg0: memref<8x16xf32, #tpu.memory_space<vmem>>, %arg1: memref<64x32xf32, #tpu.memory_space<vmem>>, %arg2: memref<16x32xf32, #tpu.memory_space<vmem>>, %arg3: memref<1x32xf32, #tpu.memory_space<vmem>>, %arg4: memref<16x32xf32, #tpu.memory_space<vmem>>, %arg5: memref<1x32xf32, #tpu.memory_space<vmem>>, %arg6: memref<2x32x128xf32, #tpu.memory_space<vmem>>, %arg7: memref<2x32x128xf32, #tpu.memory_space<vmem>>, %arg8: memref<2x1x128xf32, #tpu.memory_space<vmem>>, %arg9: memref<32x128xf32, #tpu.memory_space<vmem>>, %arg10: memref<1x128xf32, #tpu.memory_space<vmem>>, %arg11: memref<8x8x128xf32, #tpu.memory_space<vmem>>, %arg12: memref<2x8x32xf32, #tpu.memory_space<vmem>>, %arg13: memref<2x8x32xf32, #tpu.memory_space<vmem>>, %arg14: memref<64x128xf32, #tpu.memory_space<vmem>>, %arg15: memref<64x32xf32, #tpu.memory_space<vmem>>) attributes {dimension_semantics = [], scalar_prefetch = 0 : i64, scratch_operands = 2 : i64, tpu.core_type = #tpu.core_type<tc>} {
    %c0 = arith.constant 0 : index
    %c0_0 = arith.constant 0 : index
    %0 = vector.load %arg0[%c0, %c0_0] : memref<8x16xf32, #tpu.memory_space<vmem>>, vector<8x16xf32>
    %c0_1 = arith.constant 0 : index
    %c0_2 = arith.constant 0 : index
    %1 = vector.load %arg2[%c0_1, %c0_2] : memref<16x32xf32, #tpu.memory_space<vmem>>, vector<16x32xf32>
    %cst = arith.constant dense<0.000000e+00> : vector<8x32xf32>
    %2 = tpu.matmul %0, %1, %cst {dimension_numbers = #tpu.dot_dimension_numbers<[1], [0], [0], [1], [0, 0, 1, 1], [], []>} : vector<8x16xf32>, vector<16x32xf32>, vector<8x32xf32> -> vector<8x32xf32>
    %c0_3 = arith.constant 0 : index
    %c0_4 = arith.constant 0 : index
    %3 = vector.load %arg3[%c0_3, %c0_4] : memref<1x32xf32, #tpu.memory_space<vmem>>, vector<1x32xf32>
    %4 = vector.broadcast %3 : vector<1x32xf32> to vector<8x32xf32>
    %5 = arith.addf %2, %4 : vector<8x32xf32>
    %c0_5 = arith.constant 0 : index
    %c0_6 = arith.constant 0 : index
    %6 = vector.load %arg4[%c0_5, %c0_6] : memref<16x32xf32, #tpu.memory_space<vmem>>, vector<16x32xf32>
    %cst_7 = arith.constant dense<0.000000e+00> : vector<8x32xf32>
    %7 = tpu.matmul %0, %6, %cst_7 {dimension_numbers = #tpu.dot_dimension_numbers<[1], [0], [0], [1], [0, 0, 1, 1], [], []>} : vector<8x16xf32>, vector<16x32xf32>, vector<8x32xf32> -> vector<8x32xf32>
    %c0_8 = arith.constant 0 : index
    %c0_9 = arith.constant 0 : index
    %8 = vector.load %arg5[%c0_8, %c0_9] : memref<1x32xf32, #tpu.memory_space<vmem>>, vector<1x32xf32>
    %9 = vector.broadcast %8 : vector<1x32xf32> to vector<8x32xf32>
    %10 = arith.addf %7, %9 : vector<8x32xf32>
    %c0_10 = arith.constant 0 : index
    %c0_11 = arith.constant 0 : index
    %11 = vector.load %arg1[%c0_10, %c0_11] : memref<64x32xf32, #tpu.memory_space<vmem>>, vector<64x32xf32>
    %c0_12 = arith.constant 0 : index
    %c0_13 = arith.constant 0 : index
    %c0_14 = arith.constant 0 : index
    %12 = vector.load %arg6[%c0_12, %c0_13, %c0_14] : memref<2x32x128xf32, #tpu.memory_space<vmem>>, vector<1x32x128xf32>
    %13 = vector.shape_cast %12 : vector<1x32x128xf32> to vector<32x128xf32>
    %cst_15 = arith.constant dense<0.000000e+00> : vector<64x128xf32>
    %14 = tpu.matmul %11, %13, %cst_15 {dimension_numbers = #tpu.dot_dimension_numbers<[1], [0], [0], [1], [0, 0, 1, 1], [], []>} : vector<64x32xf32>, vector<32x128xf32>, vector<64x128xf32> -> vector<64x128xf32>
    %c0_16 = arith.constant 0 : index
    %c0_17 = arith.constant 0 : index
    %c0_18 = arith.constant 0 : index
    %15 = vector.load %arg8[%c0_16, %c0_17, %c0_18] : memref<2x1x128xf32, #tpu.memory_space<vmem>>, vector<1x1x128xf32>
    %16 = vector.shape_cast %15 : vector<1x1x128xf32> to vector<1x128xf32>
    %17 = vector.broadcast %16 : vector<1x128xf32> to vector<64x128xf32>
    %18 = arith.addf %14, %17 : vector<64x128xf32>
    %c0_19 = arith.constant 0 : index
    %c0_20 = arith.constant 0 : index
    %19 = vector.load %arg14[%c0_19, %c0_20] : memref<64x128xf32, #tpu.memory_space<vmem>>, vector<64x128xf32>
    tpu.vector_store %arg14[%c0_19, %c0_20], %18 {strides = array<i32>} : memref<64x128xf32, #tpu.memory_space<vmem>>, vector<64x128xf32>,
    %c0_i32 = arith.constant 0 : i32
    %c8_i32 = arith.constant 8 : i32
    %20 = arith.muli %c0_i32, %c8_i32 : i32
    %21 = tpu.assume_multiple %20, 8 : i32
    %22 = arith.index_cast %21 : i32 to index
    %c0_21 = arith.constant 0 : index
    %23 = vector.load %arg14[%22, %c0_21] : memref<64x128xf32, #tpu.memory_space<vmem>>, vector<8x128xf32>
    %c0_22 = arith.constant 0 : index
    %c0_23 = arith.constant 0 : index
    %c0_24 = arith.constant 0 : index
    %24 = vector.load %arg7[%c0_22, %c0_23, %c0_24] : memref<2x32x128xf32, #tpu.memory_space<vmem>>, vector<1x32x128xf32>
    %25 = vector.shape_cast %24 : vector<1x32x128xf32> to vector<32x128xf32>
    %cst_25 = arith.constant dense<0.000000e+00> : vector<8x128xf32>
    %26 = tpu.matmul %5, %25, %cst_25 {dimension_numbers = #tpu.dot_dimension_numbers<[1], [0], [0], [1], [0, 0, 1, 1], [], []>} : vector<8x32xf32>, vector<32x128xf32>, vector<8x128xf32> -> vector<8x128xf32>
    %27 = arith.addf %23, %26 : vector<8x128xf32>
    %28 = vector.extract_strided_slice %27 {offsets = [0, 0], sizes = [8, 32], strides = [1, 1]} : vector<8x128xf32> to vector<8x32xf32>
    %29 = arith.negf %28 : vector<8x32xf32>
    %30 = math.exp %29 : vector<8x32xf32>
    %cst_26 = arith.constant 1.000000e+00 : f32
    %31 = vector.broadcast %cst_26 : f32 to vector<8x32xf32>
    %32 = arith.addf %31, %30 : vector<8x32xf32>
    %33 = arith.divf %31, %32 : vector<8x32xf32>
    %34 = vector.extract_strided_slice %27 {offsets = [0, 32], sizes = [8, 32], strides = [1, 1]} : vector<8x128xf32> to vector<8x32xf32>
    %35 = arith.negf %34 : vector<8x32xf32>
    %36 = math.exp %35 : vector<8x32xf32>
    %cst_27 = arith.constant 1.000000e+00 : f32
    %37 = vector.broadcast %cst_27 : f32 to vector<8x32xf32>
    %38 = arith.addf %37, %36 : vector<8x32xf32>
    %39 = arith.divf %37, %38 : vector<8x32xf32>
    %40 = vector.extract_strided_slice %27 {offsets = [0, 64], sizes = [8, 32], strides = [1, 1]} : vector<8x128xf32> to vector<8x32xf32>
    %41 = math.tanh %40 : vector<8x32xf32>
    %42 = vector.extract_strided_slice %27 {offsets = [0, 96], sizes = [8, 32], strides = [1, 1]} : vector<8x128xf32> to vector<8x32xf32>
    %43 = arith.negf %42 : vector<8x32xf32>
    %44 = math.exp %43 : vector<8x32xf32>
    %cst_28 = arith.constant 1.000000e+00 : f32
    %45 = vector.broadcast %cst_28 : f32 to vector<8x32xf32>
    %46 = arith.addf %45, %44 : vector<8x32xf32>
    %47 = arith.divf %45, %46 : vector<8x32xf32>
    %48 = arith.mulf %39, %10 : vector<8x32xf32>
    %49 = arith.mulf %33, %41 : vector<8x32xf32>
    %50 = arith.addf %48, %49 : vector<8x32xf32>
    %51 = math.tanh %50 : vector<8x32xf32>
    %52 = arith.mulf %47, %51 : vector<8x32xf32>
    %c1 = arith.constant 1 : index
    %c0_29 = arith.constant 0 : index
    %c0_30 = arith.constant 0 : index
    %53 = vector.load %arg6[%c1, %c0_29, %c0_30] : memref<2x32x128xf32, #tpu.memory_space<vmem>>, vector<1x32x128xf32>
    %54 = vector.shape_cast %53 : vector<1x32x128xf32> to vector<32x128xf32>
    %cst_31 = arith.constant dense<0.000000e+00> : vector<8x128xf32>
    %55 = tpu.matmul %52, %54, %cst_31 {dimension_numbers = #tpu.dot_dimension_numbers<[1], [0], [0], [1], [0, 0, 1, 1], [], []>} : vector<8x32xf32>, vector<32x128xf32>, vector<8x128xf32> -> vector<8x128xf32>
    %c1_32 = arith.constant 1 : index
    %c0_33 = arith.constant 0 : index
    %c0_34 = arith.constant 0 : index
    %56 = vector.load %arg7[%c1_32, %c0_33, %c0_34] : memref<2x32x128xf32, #tpu.memory_space<vmem>>, vector<1x32x128xf32>
    %57 = vector.shape_cast %56 : vector<1x32x128xf32> to vector<32x128xf32>
    %cst_35 = arith.constant dense<0.000000e+00> : vector<8x128xf32>
    %58 = tpu.matmul %5, %57, %cst_35 {dimension_numbers = #tpu.dot_dimension_numbers<[1], [0], [0], [1], [0, 0, 1, 1], [], []>} : vector<8x32xf32>, vector<32x128xf32>, vector<8x128xf32> -> vector<8x128xf32>
    %59 = arith.addf %55, %58 : vector<8x128xf32>
    %c1_36 = arith.constant 1 : index
    %c0_37 = arith.constant 0 : index
    %c0_38 = arith.constant 0 : index
    %60 = vector.load %arg8[%c1_36, %c0_37, %c0_38] : memref<2x1x128xf32, #tpu.memory_space<vmem>>, vector<1x1x128xf32>
    %61 = vector.shape_cast %60 : vector<1x1x128xf32> to vector<1x128xf32>
    %62 = vector.broadcast %61 : vector<1x128xf32> to vector<8x128xf32>
    %63 = arith.addf %59, %62 : vector<8x128xf32>
    %64 = vector.extract_strided_slice %63 {offsets = [0, 0], sizes = [8, 32], strides = [1, 1]} : vector<8x128xf32> to vector<8x32xf32>
    %65 = arith.negf %64 : vector<8x32xf32>
    %66 = math.exp %65 : vector<8x32xf32>
    %cst_39 = arith.constant 1.000000e+00 : f32
    %67 = vector.broadcast %cst_39 : f32 to vector<8x32xf32>
    %68 = arith.addf %67, %66 : vector<8x32xf32>
    %69 = arith.divf %67, %68 : vector<8x32xf32>
    %70 = vector.extract_strided_slice %63 {offsets = [0, 32], sizes = [8, 32], strides = [1, 1]} : vector<8x128xf32> to vector<8x32xf32>
    %71 = arith.negf %70 : vector<8x32xf32>
    %72 = math.exp %71 : vector<8x32xf32>
    %cst_40 = arith.constant 1.000000e+00 : f32
    %73 = vector.broadcast %cst_40 : f32 to vector<8x32xf32>
    %74 = arith.addf %73, %72 : vector<8x32xf32>
    %75 = arith.divf %73, %74 : vector<8x32xf32>
    %76 = vector.extract_strided_slice %63 {offsets = [0, 64], sizes = [8, 32], strides = [1, 1]} : vector<8x128xf32> to vector<8x32xf32>
    %77 = math.tanh %76 : vector<8x32xf32>
    %78 = vector.extract_strided_slice %63 {offsets = [0, 96], sizes = [8, 32], strides = [1, 1]} : vector<8x128xf32> to vector<8x32xf32>
    %79 = arith.negf %78 : vector<8x32xf32>
    %80 = math.exp %79 : vector<8x32xf32>
    %cst_41 = arith.constant 1.000000e+00 : f32
    %81 = vector.broadcast %cst_41 : f32 to vector<8x32xf32>
    %82 = arith.addf %81, %80 : vector<8x32xf32>
    %83 = arith.divf %81, %82 : vector<8x32xf32>
    %84 = arith.mulf %75, %10 : vector<8x32xf32>
    %85 = arith.mulf %69, %77 : vector<8x32xf32>
    %86 = arith.addf %84, %85 : vector<8x32xf32>
    %87 = math.tanh %86 : vector<8x32xf32>
    %88 = arith.mulf %83, %87 : vector<8x32xf32>
    %cst_42 = arith.constant 5.000000e-01 : f32
    %89 = vector.broadcast %cst_42 : f32 to vector<8x32xf32>
    %90 = arith.mulf %89, %10 : vector<8x32xf32>
    %cst_43 = arith.constant 5.000000e-01 : f32
    %91 = vector.broadcast %cst_43 : f32 to vector<8x32xf32>
    %92 = arith.mulf %91, %50 : vector<8x32xf32>
    %93 = arith.addf %90, %92 : vector<8x32xf32>
    %cst_44 = arith.constant 5.000000e-01 : f32
    %94 = vector.broadcast %cst_44 : f32 to vector<8x32xf32>
    %95 = arith.mulf %94, %10 : vector<8x32xf32>
    %cst_45 = arith.constant 5.000000e-01 : f32
    %96 = vector.broadcast %cst_45 : f32 to vector<8x32xf32>
    %97 = arith.mulf %96, %86 : vector<8x32xf32>
    %98 = arith.addf %95, %97 : vector<8x32xf32>
    %99 = arith.index_cast %21 : i32 to index
    %c0_46 = arith.constant 0 : index
    %100 = vector.load %arg15[%99, %c0_46] : memref<64x32xf32, #tpu.memory_space<vmem>>, vector<8x32xf32>
    tpu.vector_store %arg15[%99, %c0_46], %88 {strides = array<i32>} : memref<64x32xf32, #tpu.memory_space<vmem>>, vector<8x32xf32>,
    %c1_i32 = arith.constant 1 : i32
    %c8_i32_47 = arith.constant 8 : i32
    %101 = arith.muli %c1_i32, %c8_i32_47 : i32
    %102 = tpu.assume_multiple %101, 8 : i32
    %103 = arith.index_cast %102 : i32 to index
    %c0_48 = arith.constant 0 : index
    %104 = vector.load %arg14[%103, %c0_48] : memref<64x128xf32, #tpu.memory_space<vmem>>, vector<8x128xf32>
    %c0_49 = arith.constant 0 : index
    %c0_50 = arith.constant 0 : index
    %c0_51 = arith.constant 0 : index
    %105 = vector.load %arg7[%c0_49, %c0_50, %c0_51] : memref<2x32x128xf32, #tpu.memory_space<vmem>>, vector<1x32x128xf32>
    %106 = vector.shape_cast %105 : vector<1x32x128xf32> to vector<32x128xf32>
    %cst_52 = arith.constant dense<0.000000e+00> : vector<8x128xf32>
    %107 = tpu.matmul %52, %106, %cst_52 {dimension_numbers = #tpu.dot_dimension_numbers<[1], [0], [0], [1], [0, 0, 1, 1], [], []>} : vector<8x32xf32>, vector<32x128xf32>, vector<8x128xf32> -> vector<8x128xf32>
    %108 = arith.addf %104, %107 : vector<8x128xf32>
    %109 = vector.extract_strided_slice %108 {offsets = [0, 0], sizes = [8, 32], strides = [1, 1]} : vector<8x128xf32> to vector<8x32xf32>
    %110 = arith.negf %109 : vector<8x32xf32>
    %111 = math.exp %110 : vector<8x32xf32>
    %cst_53 = arith.constant 1.000000e+00 : f32
    %112 = vector.broadcast %cst_53 : f32 to vector<8x32xf32>
    %113 = arith.addf %112, %111 : vector<8x32xf32>
    %114 = arith.divf %112, %113 : vector<8x32xf32>
    %115 = vector.extract_strided_slice %108 {offsets = [0, 32], sizes = [8, 32], strides = [1, 1]} : vector<8x128xf32> to vector<8x32xf32>
    %116 = arith.negf %115 : vector<8x32xf32>
    %117 = math.exp %116 : vector<8x32xf32>
    %cst_54 = arith.constant 1.000000e+00 : f32
    %118 = vector.broadcast %cst_54 : f32 to vector<8x32xf32>
    %119 = arith.addf %118, %117 : vector<8x32xf32>
    %120 = arith.divf %118, %119 : vector<8x32xf32>
    %121 = vector.extract_strided_slice %108 {offsets = [0, 64], sizes = [8, 32], strides = [1, 1]} : vector<8x128xf32> to vector<8x32xf32>
    %122 = math.tanh %121 : vector<8x32xf32>
    %123 = vector.extract_strided_slice %108 {offsets = [0, 96], sizes = [8, 32], strides = [1, 1]} : vector<8x128xf32> to vector<8x32xf32>
    %124 = arith.negf %123 : vector<8x32xf32>
    %125 = math.exp %124 : vector<8x32xf32>
    %cst_55 = arith.constant 1.000000e+00 : f32
    %126 = vector.broadcast %cst_55 : f32 to vector<8x32xf32>
    %127 = arith.addf %126, %125 : vector<8x32xf32>
    %128 = arith.divf %126, %127 : vector<8x32xf32>
    %129 = arith.mulf %120, %93 : vector<8x32xf32>
    %130 = arith.mulf %114, %122 : vector<8x32xf32>
    %131 = arith.addf %129, %130 : vector<8x32xf32>
    %132 = math.tanh %131 : vector<8x32xf32>
    %133 = arith.mulf %128, %132 : vector<8x32xf32>
    %c1_56 = arith.constant 1 : index
    %c0_57 = arith.constant 0 : index
    %c0_58 = arith.constant 0 : index
    %134 = vector.load %arg6[%c1_56, %c0_57, %c0_58] : memref<2x32x128xf32, #tpu.memory_space<vmem>>, vector<1x32x128xf32>
    %135 = vector.shape_cast %134 : vector<1x32x128xf32> to vector<32x128xf32>
    %cst_59 = arith.constant dense<0.000000e+00> : vector<8x128xf32>
    %136 = tpu.matmul %133, %135, %cst_59 {dimension_numbers = #tpu.dot_dimension_numbers<[1], [0], [0], [1], [0, 0, 1, 1], [], []>} : vector<8x32xf32>, vector<32x128xf32>, vector<8x128xf32> -> vector<8x128xf32>
    %c1_60 = arith.constant 1 : index
    %c0_61 = arith.constant 0 : index
    %c0_62 = arith.constant 0 : index
    %137 = vector.load %arg7[%c1_60, %c0_61, %c0_62] : memref<2x32x128xf32, #tpu.memory_space<vmem>>, vector<1x32x128xf32>
    %138 = vector.shape_cast %137 : vector<1x32x128xf32> to vector<32x128xf32>
    %cst_63 = arith.constant dense<0.000000e+00> : vector<8x128xf32>
    %139 = tpu.matmul %88, %138, %cst_63 {dimension_numbers = #tpu.dot_dimension_numbers<[1], [0], [0], [1], [0, 0, 1, 1], [], []>} : vector<8x32xf32>, vector<32x128xf32>, vector<8x128xf32> -> vector<8x128xf32>
    %140 = arith.addf %136, %139 : vector<8x128xf32>
    %c1_64 = arith.constant 1 : index
    %c0_65 = arith.constant 0 : index
    %c0_66 = arith.constant 0 : index
    %141 = vector.load %arg8[%c1_64, %c0_65, %c0_66] : memref<2x1x128xf32, #tpu.memory_space<vmem>>, vector<1x1x128xf32>
    %142 = vector.shape_cast %141 : vector<1x1x128xf32> to vector<1x128xf32>
    %143 = vector.broadcast %142 : vector<1x128xf32> to vector<8x128xf32>
    %144 = arith.addf %140, %143 : vector<8x128xf32>
    %145 = vector.extract_strided_slice %144 {offsets = [0, 0], sizes = [8, 32], strides = [1, 1]} : vector<8x128xf32> to vector<8x32xf32>
    %146 = arith.negf %145 : vector<8x32xf32>
    %147 = math.exp %146 : vector<8x32xf32>
    %cst_67 = arith.constant 1.000000e+00 : f32
    %148 = vector.broadcast %cst_67 : f32 to vector<8x32xf32>
    %149 = arith.addf %148, %147 : vector<8x32xf32>
    %150 = arith.divf %148, %149 : vector<8x32xf32>
    %151 = vector.extract_strided_slice %144 {offsets = [0, 32], sizes = [8, 32], strides = [1, 1]} : vector<8x128xf32> to vector<8x32xf32>
    %152 = arith.negf %151 : vector<8x32xf32>
    %153 = math.exp %152 : vector<8x32xf32>
    %cst_68 = arith.constant 1.000000e+00 : f32
    %154 = vector.broadcast %cst_68 : f32 to vector<8x32xf32>
    %155 = arith.addf %154, %153 : vector<8x32xf32>
    %156 = arith.divf %154, %155 : vector<8x32xf32>
    %157 = vector.extract_strided_slice %144 {offsets = [0, 64], sizes = [8, 32], strides = [1, 1]} : vector<8x128xf32> to vector<8x32xf32>
    %158 = math.tanh %157 : vector<8x32xf32>
    %159 = vector.extract_strided_slice %144 {offsets = [0, 96], sizes = [8, 32], strides = [1, 1]} : vector<8x128xf32> to vector<8x32xf32>
    %160 = arith.negf %159 : vector<8x32xf32>
    %161 = math.exp %160 : vector<8x32xf32>
    %cst_69 = arith.constant 1.000000e+00 : f32
    %162 = vector.broadcast %cst_69 : f32 to vector<8x32xf32>
    %163 = arith.addf %162, %161 : vector<8x32xf32>
    %164 = arith.divf %162, %163 : vector<8x32xf32>
    %165 = arith.mulf %156, %98 : vector<8x32xf32>
    %166 = arith.mulf %150, %158 : vector<8x32xf32>
    %167 = arith.addf %165, %166 : vector<8x32xf32>
    %168 = math.tanh %167 : vector<8x32xf32>
    %169 = arith.mulf %164, %168 : vector<8x32xf32>
    %cst_70 = arith.constant 5.000000e-01 : f32
    %170 = vector.broadcast %cst_70 : f32 to vector<8x32xf32>
    %171 = arith.mulf %170, %10 : vector<8x32xf32>
    %cst_71 = arith.constant 5.000000e-01 : f32
    %172 = vector.broadcast %cst_71 : f32 to vector<8x32xf32>
    %173 = arith.mulf %172, %131 : vector<8x32xf32>
    %174 = arith.addf %171, %173 : vector<8x32xf32>
    %cst_72 = arith.constant 5.000000e-01 : f32
    %175 = vector.broadcast %cst_72 : f32 to vector<8x32xf32>
    %176 = arith.mulf %175, %10 : vector<8x32xf32>
    %cst_73 = arith.constant 5.000000e-01 : f32
    %177 = vector.broadcast %cst_73 : f32 to vector<8x32xf32>
    %178 = arith.mulf %177, %167 : vector<8x32xf32>
    %179 = arith.addf %176, %178 : vector<8x32xf32>
    %180 = arith.index_cast %102 : i32 to index
    %c0_74 = arith.constant 0 : index
    %181 = vector.load %arg15[%180, %c0_74] : memref<64x32xf32, #tpu.memory_space<vmem>>, vector<8x32xf32>
    tpu.vector_store %arg15[%180, %c0_74], %169 {strides = array<i32>} : memref<64x32xf32, #tpu.memory_space<vmem>>, vector<8x32xf32>,
    %c2_i32 = arith.constant 2 : i32
    %c8_i32_75 = arith.constant 8 : i32
    %182 = arith.muli %c2_i32, %c8_i32_75 : i32
    %183 = tpu.assume_multiple %182, 8 : i32
    %184 = arith.index_cast %183 : i32 to index
    %c0_76 = arith.constant 0 : index
    %185 = vector.load %arg14[%184, %c0_76] : memref<64x128xf32, #tpu.memory_space<vmem>>, vector<8x128xf32>
    %c0_77 = arith.constant 0 : index
    %c0_78 = arith.constant 0 : index
    %c0_79 = arith.constant 0 : index
    %186 = vector.load %arg7[%c0_77, %c0_78, %c0_79] : memref<2x32x128xf32, #tpu.memory_space<vmem>>, vector<1x32x128xf32>
    %187 = vector.shape_cast %186 : vector<1x32x128xf32> to vector<32x128xf32>
    %cst_80 = arith.constant dense<0.000000e+00> : vector<8x128xf32>
    %188 = tpu.matmul %133, %187, %cst_80 {dimension_numbers = #tpu.dot_dimension_numbers<[1], [0], [0], [1], [0, 0, 1, 1], [], []>} : vector<8x32xf32>, vector<32x128xf32>, vector<8x128xf32> -> vector<8x128xf32>
    %189 = arith.addf %185, %188 : vector<8x128xf32>
    %190 = vector.extract_strided_slice %189 {offsets = [0, 0], sizes = [8, 32], strides = [1, 1]} : vector<8x128xf32> to vector<8x32xf32>
    %191 = arith.negf %190 : vector<8x32xf32>
    %192 = math.exp %191 : vector<8x32xf32>
    %cst_81 = arith.constant 1.000000e+00 : f32
    %193 = vector.broadcast %cst_81 : f32 to vector<8x32xf32>
    %194 = arith.addf %193, %192 : vector<8x32xf32>
    %195 = arith.divf %193, %194 : vector<8x32xf32>
    %196 = vector.extract_strided_slice %189 {offsets = [0, 32], sizes = [8, 32], strides = [1, 1]} : vector<8x128xf32> to vector<8x32xf32>
    %197 = arith.negf %196 : vector<8x32xf32>
    %198 = math.exp %197 : vector<8x32xf32>
    %cst_82 = arith.constant 1.000000e+00 : f32
    %199 = vector.broadcast %cst_82 : f32 to vector<8x32xf32>
    %200 = arith.addf %199, %198 : vector<8x32xf32>
    %201 = arith.divf %199, %200 : vector<8x32xf32>
    %202 = vector.extract_strided_slice %189 {offsets = [0, 64], sizes = [8, 32], strides = [1, 1]} : vector<8x128xf32> to vector<8x32xf32>
    %203 = math.tanh %202 : vector<8x32xf32>
    %204 = vector.extract_strided_slice %189 {offsets = [0, 96], sizes = [8, 32], strides = [1, 1]} : vector<8x128xf32> to vector<8x32xf32>
    %205 = arith.negf %204 : vector<8x32xf32>
    %206 = math.exp %205 : vector<8x32xf32>
    %cst_83 = arith.constant 1.000000e+00 : f32
    %207 = vector.broadcast %cst_83 : f32 to vector<8x32xf32>
    %208 = arith.addf %207, %206 : vector<8x32xf32>
    %209 = arith.divf %207, %208 : vector<8x32xf32>
    %210 = arith.mulf %201, %174 : vector<8x32xf32>
    %211 = arith.mulf %195, %203 : vector<8x32xf32>
    %212 = arith.addf %210, %211 : vector<8x32xf32>
    %213 = math.tanh %212 : vector<8x32xf32>
    %214 = arith.mulf %209, %213 : vector<8x32xf32>
    %c1_84 = arith.constant 1 : index
    %c0_85 = arith.constant 0 : index
    %c0_86 = arith.constant 0 : index
    %215 = vector.load %arg6[%c1_84, %c0_85, %c0_86] : memref<2x32x128xf32, #tpu.memory_space<vmem>>, vector<1x32x128xf32>
    %216 = vector.shape_cast %215 : vector<1x32x128xf32> to vector<32x128xf32>
    %cst_87 = arith.constant dense<0.000000e+00> : vector<8x128xf32>
    %217 = tpu.matmul %214, %216, %cst_87 {dimension_numbers = #tpu.dot_dimension_numbers<[1], [0], [0], [1], [0, 0, 1, 1], [], []>} : vector<8x32xf32>, vector<32x128xf32>, vector<8x128xf32> -> vector<8x128xf32>
    %c1_88 = arith.constant 1 : index
    %c0_89 = arith.constant 0 : index
    %c0_90 = arith.constant 0 : index
    %218 = vector.load %arg7[%c1_88, %c0_89, %c0_90] : memref<2x32x128xf32, #tpu.memory_space<vmem>>, vector<1x32x128xf32>
    %219 = vector.shape_cast %218 : vector<1x32x128xf32> to vector<32x128xf32>
    %cst_91 = arith.constant dense<0.000000e+00> : vector<8x128xf32>
    %220 = tpu.matmul %169, %219, %cst_91 {dimension_numbers = #tpu.dot_dimension_numbers<[1], [0], [0], [1], [0, 0, 1, 1], [], []>} : vector<8x32xf32>, vector<32x128xf32>, vector<8x128xf32> -> vector<8x128xf32>
    %221 = arith.addf %217, %220 : vector<8x128xf32>
    %c1_92 = arith.constant 1 : index
    %c0_93 = arith.constant 0 : index
    %c0_94 = arith.constant 0 : index
    %222 = vector.load %arg8[%c1_92, %c0_93, %c0_94] : memref<2x1x128xf32, #tpu.memory_space<vmem>>, vector<1x1x128xf32>
    %223 = vector.shape_cast %222 : vector<1x1x128xf32> to vector<1x128xf32>
    %224 = vector.broadcast %223 : vector<1x128xf32> to vector<8x128xf32>
    %225 = arith.addf %221, %224 : vector<8x128xf32>
    %226 = vector.extract_strided_slice %225 {offsets = [0, 0], sizes = [8, 32], strides = [1, 1]} : vector<8x128xf32> to vector<8x32xf32>
    %227 = arith.negf %226 : vector<8x32xf32>
    %228 = math.exp %227 : vector<8x32xf32>
    %cst_95 = arith.constant 1.000000e+00 : f32
    %229 = vector.broadcast %cst_95 : f32 to vector<8x32xf32>
    %230 = arith.addf %229, %228 : vector<8x32xf32>
    %231 = arith.divf %229, %230 : vector<8x32xf32>
    %232 = vector.extract_strided_slice %225 {offsets = [0, 32], sizes = [8, 32], strides = [1, 1]} : vector<8x128xf32> to vector<8x32xf32>
    %233 = arith.negf %232 : vector<8x32xf32>
    %234 = math.exp %233 : vector<8x32xf32>
    %cst_96 = arith.constant 1.000000e+00 : f32
    %235 = vector.broadcast %cst_96 : f32 to vector<8x32xf32>
    %236 = arith.addf %235, %234 : vector<8x32xf32>
    %237 = arith.divf %235, %236 : vector<8x32xf32>
    %238 = vector.extract_strided_slice %225 {offsets = [0, 64], sizes = [8, 32], strides = [1, 1]} : vector<8x128xf32> to vector<8x32xf32>
    %239 = math.tanh %238 : vector<8x32xf32>
    %240 = vector.extract_strided_slice %225 {offsets = [0, 96], sizes = [8, 32], strides = [1, 1]} : vector<8x128xf32> to vector<8x32xf32>
    %241 = arith.negf %240 : vector<8x32xf32>
    %242 = math.exp %241 : vector<8x32xf32>
    %cst_97 = arith.constant 1.000000e+00 : f32
    %243 = vector.broadcast %cst_97 : f32 to vector<8x32xf32>
    %244 = arith.addf %243, %242 : vector<8x32xf32>
    %245 = arith.divf %243, %244 : vector<8x32xf32>
    %246 = arith.mulf %237, %179 : vector<8x32xf32>
    %247 = arith.mulf %231, %239 : vector<8x32xf32>
    %248 = arith.addf %246, %247 : vector<8x32xf32>
    %249 = math.tanh %248 : vector<8x32xf32>
    %250 = arith.mulf %245, %249 : vector<8x32xf32>
    %cst_98 = arith.constant 5.000000e-01 : f32
    %251 = vector.broadcast %cst_98 : f32 to vector<8x32xf32>
    %252 = arith.mulf %251, %10 : vector<8x32xf32>
    %cst_99 = arith.constant 5.000000e-01 : f32
    %253 = vector.broadcast %cst_99 : f32 to vector<8x32xf32>
    %254 = arith.mulf %253, %212 : vector<8x32xf32>
    %255 = arith.addf %252, %254 : vector<8x32xf32>
    %cst_100 = arith.constant 5.000000e-01 : f32
    %256 = vector.broadcast %cst_100 : f32 to vector<8x32xf32>
    %257 = arith.mulf %256, %10 : vector<8x32xf32>
    %cst_101 = arith.constant 5.000000e-01 : f32
    %258 = vector.broadcast %cst_101 : f32 to vector<8x32xf32>
    %259 = arith.mulf %258, %248 : vector<8x32xf32>
    %260 = arith.addf %257, %259 : vector<8x32xf32>
    %261 = arith.index_cast %183 : i32 to index
    %c0_102 = arith.constant 0 : index
    %262 = vector.load %arg15[%261, %c0_102] : memref<64x32xf32, #tpu.memory_space<vmem>>, vector<8x32xf32>
    tpu.vector_store %arg15[%261, %c0_102], %250 {strides = array<i32>} : memref<64x32xf32, #tpu.memory_space<vmem>>, vector<8x32xf32>,
    %c3_i32 = arith.constant 3 : i32
    %c8_i32_103 = arith.constant 8 : i32
    %263 = arith.muli %c3_i32, %c8_i32_103 : i32
    %264 = tpu.assume_multiple %263, 8 : i32
    %265 = arith.index_cast %264 : i32 to index
    %c0_104 = arith.constant 0 : index
    %266 = vector.load %arg14[%265, %c0_104] : memref<64x128xf32, #tpu.memory_space<vmem>>, vector<8x128xf32>
    %c0_105 = arith.constant 0 : index
    %c0_106 = arith.constant 0 : index
    %c0_107 = arith.constant 0 : index
    %267 = vector.load %arg7[%c0_105, %c0_106, %c0_107] : memref<2x32x128xf32, #tpu.memory_space<vmem>>, vector<1x32x128xf32>
    %268 = vector.shape_cast %267 : vector<1x32x128xf32> to vector<32x128xf32>
    %cst_108 = arith.constant dense<0.000000e+00> : vector<8x128xf32>
    %269 = tpu.matmul %214, %268, %cst_108 {dimension_numbers = #tpu.dot_dimension_numbers<[1], [0], [0], [1], [0, 0, 1, 1], [], []>} : vector<8x32xf32>, vector<32x128xf32>, vector<8x128xf32> -> vector<8x128xf32>
    %270 = arith.addf %266, %269 : vector<8x128xf32>
    %271 = vector.extract_strided_slice %270 {offsets = [0, 0], sizes = [8, 32], strides = [1, 1]} : vector<8x128xf32> to vector<8x32xf32>
    %272 = arith.negf %271 : vector<8x32xf32>
    %273 = math.exp %272 : vector<8x32xf32>
    %cst_109 = arith.constant 1.000000e+00 : f32
    %274 = vector.broadcast %cst_109 : f32 to vector<8x32xf32>
    %275 = arith.addf %274, %273 : vector<8x32xf32>
    %276 = arith.divf %274, %275 : vector<8x32xf32>
    %277 = vector.extract_strided_slice %270 {offsets = [0, 32], sizes = [8, 32], strides = [1, 1]} : vector<8x128xf32> to vector<8x32xf32>
    %278 = arith.negf %277 : vector<8x32xf32>
    %279 = math.exp %278 : vector<8x32xf32>
    %cst_110 = arith.constant 1.000000e+00 : f32
    %280 = vector.broadcast %cst_110 : f32 to vector<8x32xf32>
    %281 = arith.addf %280, %279 : vector<8x32xf32>
    %282 = arith.divf %280, %281 : vector<8x32xf32>
    %283 = vector.extract_strided_slice %270 {offsets = [0, 64], sizes = [8, 32], strides = [1, 1]} : vector<8x128xf32> to vector<8x32xf32>
    %284 = math.tanh %283 : vector<8x32xf32>
    %285 = vector.extract_strided_slice %270 {offsets = [0, 96], sizes = [8, 32], strides = [1, 1]} : vector<8x128xf32> to vector<8x32xf32>
    %286 = arith.negf %285 : vector<8x32xf32>
    %287 = math.exp %286 : vector<8x32xf32>
    %cst_111 = arith.constant 1.000000e+00 : f32
    %288 = vector.broadcast %cst_111 : f32 to vector<8x32xf32>
    %289 = arith.addf %288, %287 : vector<8x32xf32>
    %290 = arith.divf %288, %289 : vector<8x32xf32>
    %291 = arith.mulf %282, %255 : vector<8x32xf32>
    %292 = arith.mulf %276, %284 : vector<8x32xf32>
    %293 = arith.addf %291, %292 : vector<8x32xf32>
    %294 = math.tanh %293 : vector<8x32xf32>
    %295 = arith.mulf %290, %294 : vector<8x32xf32>
    %c1_112 = arith.constant 1 : index
    %c0_113 = arith.constant 0 : index
    %c0_114 = arith.constant 0 : index
    %296 = vector.load %arg6[%c1_112, %c0_113, %c0_114] : memref<2x32x128xf32, #tpu.memory_space<vmem>>, vector<1x32x128xf32>
    %297 = vector.shape_cast %296 : vector<1x32x128xf32> to vector<32x128xf32>
    %cst_115 = arith.constant dense<0.000000e+00> : vector<8x128xf32>
    %298 = tpu.matmul %295, %297, %cst_115 {dimension_numbers = #tpu.dot_dimension_numbers<[1], [0], [0], [1], [0, 0, 1, 1], [], []>} : vector<8x32xf32>, vector<32x128xf32>, vector<8x128xf32> -> vector<8x128xf32>
    %c1_116 = arith.constant 1 : index
    %c0_117 = arith.constant 0 : index
    %c0_118 = arith.constant 0 : index
    %299 = vector.load %arg7[%c1_116, %c0_117, %c0_118] : memref<2x32x128xf32, #tpu.memory_space<vmem>>, vector<1x32x128xf32>
    %300 = vector.shape_cast %299 : vector<1x32x128xf32> to vector<32x128xf32>
    %cst_119 = arith.constant dense<0.000000e+00> : vector<8x128xf32>
    %301 = tpu.matmul %250, %300, %cst_119 {dimension_numbers = #tpu.dot_dimension_numbers<[1], [0], [0], [1], [0, 0, 1, 1], [], []>} : vector<8x32xf32>, vector<32x128xf32>, vector<8x128xf32> -> vector<8x128xf32>
    %302 = arith.addf %298, %301 : vector<8x128xf32>
    %c1_120 = arith.constant 1 : index
    %c0_121 = arith.constant 0 : index
    %c0_122 = arith.constant 0 : index
    %303 = vector.load %arg8[%c1_120, %c0_121, %c0_122] : memref<2x1x128xf32, #tpu.memory_space<vmem>>, vector<1x1x128xf32>
    %304 = vector.shape_cast %303 : vector<1x1x128xf32> to vector<1x128xf32>
    %305 = vector.broadcast %304 : vector<1x128xf32> to vector<8x128xf32>
    %306 = arith.addf %302, %305 : vector<8x128xf32>
    %307 = vector.extract_strided_slice %306 {offsets = [0, 0], sizes = [8, 32], strides = [1, 1]} : vector<8x128xf32> to vector<8x32xf32>
    %308 = arith.negf %307 : vector<8x32xf32>
    %309 = math.exp %308 : vector<8x32xf32>
    %cst_123 = arith.constant 1.000000e+00 : f32
    %310 = vector.broadcast %cst_123 : f32 to vector<8x32xf32>
    %311 = arith.addf %310, %309 : vector<8x32xf32>
    %312 = arith.divf %310, %311 : vector<8x32xf32>
    %313 = vector.extract_strided_slice %306 {offsets = [0, 32], sizes = [8, 32], strides = [1, 1]} : vector<8x128xf32> to vector<8x32xf32>
    %314 = arith.negf %313 : vector<8x32xf32>
    %315 = math.exp %314 : vector<8x32xf32>
    %cst_124 = arith.constant 1.000000e+00 : f32
    %316 = vector.broadcast %cst_124 : f32 to vector<8x32xf32>
    %317 = arith.addf %316, %315 : vector<8x32xf32>
    %318 = arith.divf %316, %317 : vector<8x32xf32>
    %319 = vector.extract_strided_slice %306 {offsets = [0, 64], sizes = [8, 32], strides = [1, 1]} : vector<8x128xf32> to vector<8x32xf32>
    %320 = math.tanh %319 : vector<8x32xf32>
    %321 = vector.extract_strided_slice %306 {offsets = [0, 96], sizes = [8, 32], strides = [1, 1]} : vector<8x128xf32> to vector<8x32xf32>
    %322 = arith.negf %321 : vector<8x32xf32>
    %323 = math.exp %322 : vector<8x32xf32>
    %cst_125 = arith.constant 1.000000e+00 : f32
    %324 = vector.broadcast %cst_125 : f32 to vector<8x32xf32>
    %325 = arith.addf %324, %323 : vector<8x32xf32>
    %326 = arith.divf %324, %325 : vector<8x32xf32>
    %327 = arith.mulf %318, %260 : vector<8x32xf32>
    %328 = arith.mulf %312, %320 : vector<8x32xf32>
    %329 = arith.addf %327, %328 : vector<8x32xf32>
    %330 = math.tanh %329 : vector<8x32xf32>
    %331 = arith.mulf %326, %330 : vector<8x32xf32>
    %cst_126 = arith.constant 5.000000e-01 : f32
    %332 = vector.broadcast %cst_126 : f32 to vector<8x32xf32>
    %333 = arith.mulf %332, %10 : vector<8x32xf32>
    %cst_127 = arith.constant 5.000000e-01 : f32
    %334 = vector.broadcast %cst_127 : f32 to vector<8x32xf32>
    %335 = arith.mulf %334, %293 : vector<8x32xf32>
    %336 = arith.addf %333, %335 : vector<8x32xf32>
    %cst_128 = arith.constant 5.000000e-01 : f32
    %337 = vector.broadcast %cst_128 : f32 to vector<8x32xf32>
    %338 = arith.mulf %337, %10 : vector<8x32xf32>
    %cst_129 = arith.constant 5.000000e-01 : f32
    %339 = vector.broadcast %cst_129 : f32 to vector<8x32xf32>
    %340 = arith.mulf %339, %329 : vector<8x32xf32>
    %341 = arith.addf %338, %340 : vector<8x32xf32>
    %342 = arith.index_cast %264 : i32 to index
    %c0_130 = arith.constant 0 : index
    %343 = vector.load %arg15[%342, %c0_130] : memref<64x32xf32, #tpu.memory_space<vmem>>, vector<8x32xf32>
    tpu.vector_store %arg15[%342, %c0_130], %331 {strides = array<i32>} : memref<64x32xf32, #tpu.memory_space<vmem>>, vector<8x32xf32>,
    %c4_i32 = arith.constant 4 : i32
    %c8_i32_131 = arith.constant 8 : i32
    %344 = arith.muli %c4_i32, %c8_i32_131 : i32
    %345 = tpu.assume_multiple %344, 8 : i32
    %346 = arith.index_cast %345 : i32 to index
    %c0_132 = arith.constant 0 : index
    %347 = vector.load %arg14[%346, %c0_132] : memref<64x128xf32, #tpu.memory_space<vmem>>, vector<8x128xf32>
    %c0_133 = arith.constant 0 : index
    %c0_134 = arith.constant 0 : index
    %c0_135 = arith.constant 0 : index
    %348 = vector.load %arg7[%c0_133, %c0_134, %c0_135] : memref<2x32x128xf32, #tpu.memory_space<vmem>>, vector<1x32x128xf32>
    %349 = vector.shape_cast %348 : vector<1x32x128xf32> to vector<32x128xf32>
    %cst_136 = arith.constant dense<0.000000e+00> : vector<8x128xf32>
    %350 = tpu.matmul %295, %349, %cst_136 {dimension_numbers = #tpu.dot_dimension_numbers<[1], [0], [0], [1], [0, 0, 1, 1], [], []>} : vector<8x32xf32>, vector<32x128xf32>, vector<8x128xf32> -> vector<8x128xf32>
    %351 = arith.addf %347, %350 : vector<8x128xf32>
    %352 = vector.extract_strided_slice %351 {offsets = [0, 0], sizes = [8, 32], strides = [1, 1]} : vector<8x128xf32> to vector<8x32xf32>
    %353 = arith.negf %352 : vector<8x32xf32>
    %354 = math.exp %353 : vector<8x32xf32>
    %cst_137 = arith.constant 1.000000e+00 : f32
    %355 = vector.broadcast %cst_137 : f32 to vector<8x32xf32>
    %356 = arith.addf %355, %354 : vector<8x32xf32>
    %357 = arith.divf %355, %356 : vector<8x32xf32>
    %358 = vector.extract_strided_slice %351 {offsets = [0, 32], sizes = [8, 32], strides = [1, 1]} : vector<8x128xf32> to vector<8x32xf32>
    %359 = arith.negf %358 : vector<8x32xf32>
    %360 = math.exp %359 : vector<8x32xf32>
    %cst_138 = arith.constant 1.000000e+00 : f32
    %361 = vector.broadcast %cst_138 : f32 to vector<8x32xf32>
    %362 = arith.addf %361, %360 : vector<8x32xf32>
    %363 = arith.divf %361, %362 : vector<8x32xf32>
    %364 = vector.extract_strided_slice %351 {offsets = [0, 64], sizes = [8, 32], strides = [1, 1]} : vector<8x128xf32> to vector<8x32xf32>
    %365 = math.tanh %364 : vector<8x32xf32>
    %366 = vector.extract_strided_slice %351 {offsets = [0, 96], sizes = [8, 32], strides = [1, 1]} : vector<8x128xf32> to vector<8x32xf32>
    %367 = arith.negf %366 : vector<8x32xf32>
    %368 = math.exp %367 : vector<8x32xf32>
    %cst_139 = arith.constant 1.000000e+00 : f32
    %369 = vector.broadcast %cst_139 : f32 to vector<8x32xf32>
    %370 = arith.addf %369, %368 : vector<8x32xf32>
    %371 = arith.divf %369, %370 : vector<8x32xf32>
    %372 = arith.mulf %363, %336 : vector<8x32xf32>
    %373 = arith.mulf %357, %365 : vector<8x32xf32>
    %374 = arith.addf %372, %373 : vector<8x32xf32>
    %375 = math.tanh %374 : vector<8x32xf32>
    %376 = arith.mulf %371, %375 : vector<8x32xf32>
    %c1_140 = arith.constant 1 : index
    %c0_141 = arith.constant 0 : index
    %c0_142 = arith.constant 0 : index
    %377 = vector.load %arg6[%c1_140, %c0_141, %c0_142] : memref<2x32x128xf32, #tpu.memory_space<vmem>>, vector<1x32x128xf32>
    %378 = vector.shape_cast %377 : vector<1x32x128xf32> to vector<32x128xf32>
    %cst_143 = arith.constant dense<0.000000e+00> : vector<8x128xf32>
    %379 = tpu.matmul %376, %378, %cst_143 {dimension_numbers = #tpu.dot_dimension_numbers<[1], [0], [0], [1], [0, 0, 1, 1], [], []>} : vector<8x32xf32>, vector<32x128xf32>, vector<8x128xf32> -> vector<8x128xf32>
    %c1_144 = arith.constant 1 : index
    %c0_145 = arith.constant 0 : index
    %c0_146 = arith.constant 0 : index
    %380 = vector.load %arg7[%c1_144, %c0_145, %c0_146] : memref<2x32x128xf32, #tpu.memory_space<vmem>>, vector<1x32x128xf32>
    %381 = vector.shape_cast %380 : vector<1x32x128xf32> to vector<32x128xf32>
    %cst_147 = arith.constant dense<0.000000e+00> : vector<8x128xf32>
    %382 = tpu.matmul %331, %381, %cst_147 {dimension_numbers = #tpu.dot_dimension_numbers<[1], [0], [0], [1], [0, 0, 1, 1], [], []>} : vector<8x32xf32>, vector<32x128xf32>, vector<8x128xf32> -> vector<8x128xf32>
    %383 = arith.addf %379, %382 : vector<8x128xf32>
    %c1_148 = arith.constant 1 : index
    %c0_149 = arith.constant 0 : index
    %c0_150 = arith.constant 0 : index
    %384 = vector.load %arg8[%c1_148, %c0_149, %c0_150] : memref<2x1x128xf32, #tpu.memory_space<vmem>>, vector<1x1x128xf32>
    %385 = vector.shape_cast %384 : vector<1x1x128xf32> to vector<1x128xf32>
    %386 = vector.broadcast %385 : vector<1x128xf32> to vector<8x128xf32>
    %387 = arith.addf %383, %386 : vector<8x128xf32>
    %388 = vector.extract_strided_slice %387 {offsets = [0, 0], sizes = [8, 32], strides = [1, 1]} : vector<8x128xf32> to vector<8x32xf32>
    %389 = arith.negf %388 : vector<8x32xf32>
    %390 = math.exp %389 : vector<8x32xf32>
    %cst_151 = arith.constant 1.000000e+00 : f32
    %391 = vector.broadcast %cst_151 : f32 to vector<8x32xf32>
    %392 = arith.addf %391, %390 : vector<8x32xf32>
    %393 = arith.divf %391, %392 : vector<8x32xf32>
    %394 = vector.extract_strided_slice %387 {offsets = [0, 32], sizes = [8, 32], strides = [1, 1]} : vector<8x128xf32> to vector<8x32xf32>
    %395 = arith.negf %394 : vector<8x32xf32>
    %396 = math.exp %395 : vector<8x32xf32>
    %cst_152 = arith.constant 1.000000e+00 : f32
    %397 = vector.broadcast %cst_152 : f32 to vector<8x32xf32>
    %398 = arith.addf %397, %396 : vector<8x32xf32>
    %399 = arith.divf %397, %398 : vector<8x32xf32>
    %400 = vector.extract_strided_slice %387 {offsets = [0, 64], sizes = [8, 32], strides = [1, 1]} : vector<8x128xf32> to vector<8x32xf32>
    %401 = math.tanh %400 : vector<8x32xf32>
    %402 = vector.extract_strided_slice %387 {offsets = [0, 96], sizes = [8, 32], strides = [1, 1]} : vector<8x128xf32> to vector<8x32xf32>
    %403 = arith.negf %402 : vector<8x32xf32>
    %404 = math.exp %403 : vector<8x32xf32>
    %cst_153 = arith.constant 1.000000e+00 : f32
    %405 = vector.broadcast %cst_153 : f32 to vector<8x32xf32>
    %406 = arith.addf %405, %404 : vector<8x32xf32>
    %407 = arith.divf %405, %406 : vector<8x32xf32>
    %408 = arith.mulf %399, %341 : vector<8x32xf32>
    %409 = arith.mulf %393, %401 : vector<8x32xf32>
    %410 = arith.addf %408, %409 : vector<8x32xf32>
    %411 = math.tanh %410 : vector<8x32xf32>
    %412 = arith.mulf %407, %411 : vector<8x32xf32>
    %cst_154 = arith.constant 5.000000e-01 : f32
    %413 = vector.broadcast %cst_154 : f32 to vector<8x32xf32>
    %414 = arith.mulf %413, %10 : vector<8x32xf32>
    %cst_155 = arith.constant 5.000000e-01 : f32
    %415 = vector.broadcast %cst_155 : f32 to vector<8x32xf32>
    %416 = arith.mulf %415, %374 : vector<8x32xf32>
    %417 = arith.addf %414, %416 : vector<8x32xf32>
    %cst_156 = arith.constant 5.000000e-01 : f32
    %418 = vector.broadcast %cst_156 : f32 to vector<8x32xf32>
    %419 = arith.mulf %418, %10 : vector<8x32xf32>
    %cst_157 = arith.constant 5.000000e-01 : f32
    %420 = vector.broadcast %cst_157 : f32 to vector<8x32xf32>
    %421 = arith.mulf %420, %410 : vector<8x32xf32>
    %422 = arith.addf %419, %421 : vector<8x32xf32>
    %423 = arith.index_cast %345 : i32 to index
    %c0_158 = arith.constant 0 : index
    %424 = vector.load %arg15[%423, %c0_158] : memref<64x32xf32, #tpu.memory_space<vmem>>, vector<8x32xf32>
    tpu.vector_store %arg15[%423, %c0_158], %412 {strides = array<i32>} : memref<64x32xf32, #tpu.memory_space<vmem>>, vector<8x32xf32>,
    %c5_i32 = arith.constant 5 : i32
    %c8_i32_159 = arith.constant 8 : i32
    %425 = arith.muli %c5_i32, %c8_i32_159 : i32
    %426 = tpu.assume_multiple %425, 8 : i32
    %427 = arith.index_cast %426 : i32 to index
    %c0_160 = arith.constant 0 : index
    %428 = vector.load %arg14[%427, %c0_160] : memref<64x128xf32, #tpu.memory_space<vmem>>, vector<8x128xf32>
    %c0_161 = arith.constant 0 : index
    %c0_162 = arith.constant 0 : index
    %c0_163 = arith.constant 0 : index
    %429 = vector.load %arg7[%c0_161, %c0_162, %c0_163] : memref<2x32x128xf32, #tpu.memory_space<vmem>>, vector<1x32x128xf32>
    %430 = vector.shape_cast %429 : vector<1x32x128xf32> to vector<32x128xf32>
    %cst_164 = arith.constant dense<0.000000e+00> : vector<8x128xf32>
    %431 = tpu.matmul %376, %430, %cst_164 {dimension_numbers = #tpu.dot_dimension_numbers<[1], [0], [0], [1], [0, 0, 1, 1], [], []>} : vector<8x32xf32>, vector<32x128xf32>, vector<8x128xf32> -> vector<8x128xf32>
    %432 = arith.addf %428, %431 : vector<8x128xf32>
    %433 = vector.extract_strided_slice %432 {offsets = [0, 0], sizes = [8, 32], strides = [1, 1]} : vector<8x128xf32> to vector<8x32xf32>
    %434 = arith.negf %433 : vector<8x32xf32>
    %435 = math.exp %434 : vector<8x32xf32>
    %cst_165 = arith.constant 1.000000e+00 : f32
    %436 = vector.broadcast %cst_165 : f32 to vector<8x32xf32>
    %437 = arith.addf %436, %435 : vector<8x32xf32>
    %438 = arith.divf %436, %437 : vector<8x32xf32>
    %439 = vector.extract_strided_slice %432 {offsets = [0, 32], sizes = [8, 32], strides = [1, 1]} : vector<8x128xf32> to vector<8x32xf32>
    %440 = arith.negf %439 : vector<8x32xf32>
    %441 = math.exp %440 : vector<8x32xf32>
    %cst_166 = arith.constant 1.000000e+00 : f32
    %442 = vector.broadcast %cst_166 : f32 to vector<8x32xf32>
    %443 = arith.addf %442, %441 : vector<8x32xf32>
    %444 = arith.divf %442, %443 : vector<8x32xf32>
    %445 = vector.extract_strided_slice %432 {offsets = [0, 64], sizes = [8, 32], strides = [1, 1]} : vector<8x128xf32> to vector<8x32xf32>
    %446 = math.tanh %445 : vector<8x32xf32>
    %447 = vector.extract_strided_slice %432 {offsets = [0, 96], sizes = [8, 32], strides = [1, 1]} : vector<8x128xf32> to vector<8x32xf32>
    %448 = arith.negf %447 : vector<8x32xf32>
    %449 = math.exp %448 : vector<8x32xf32>
    %cst_167 = arith.constant 1.000000e+00 : f32
    %450 = vector.broadcast %cst_167 : f32 to vector<8x32xf32>
    %451 = arith.addf %450, %449 : vector<8x32xf32>
    %452 = arith.divf %450, %451 : vector<8x32xf32>
    %453 = arith.mulf %444, %417 : vector<8x32xf32>
    %454 = arith.mulf %438, %446 : vector<8x32xf32>
    %455 = arith.addf %453, %454 : vector<8x32xf32>
    %456 = math.tanh %455 : vector<8x32xf32>
    %457 = arith.mulf %452, %456 : vector<8x32xf32>
    %c1_168 = arith.constant 1 : index
    %c0_169 = arith.constant 0 : index
    %c0_170 = arith.constant 0 : index
    %458 = vector.load %arg6[%c1_168, %c0_169, %c0_170] : memref<2x32x128xf32, #tpu.memory_space<vmem>>, vector<1x32x128xf32>
    %459 = vector.shape_cast %458 : vector<1x32x128xf32> to vector<32x128xf32>
    %cst_171 = arith.constant dense<0.000000e+00> : vector<8x128xf32>
    %460 = tpu.matmul %457, %459, %cst_171 {dimension_numbers = #tpu.dot_dimension_numbers<[1], [0], [0], [1], [0, 0, 1, 1], [], []>} : vector<8x32xf32>, vector<32x128xf32>, vector<8x128xf32> -> vector<8x128xf32>
    %c1_172 = arith.constant 1 : index
    %c0_173 = arith.constant 0 : index
    %c0_174 = arith.constant 0 : index
    %461 = vector.load %arg7[%c1_172, %c0_173, %c0_174] : memref<2x32x128xf32, #tpu.memory_space<vmem>>, vector<1x32x128xf32>
    %462 = vector.shape_cast %461 : vector<1x32x128xf32> to vector<32x128xf32>
    %cst_175 = arith.constant dense<0.000000e+00> : vector<8x128xf32>
    %463 = tpu.matmul %412, %462, %cst_175 {dimension_numbers = #tpu.dot_dimension_numbers<[1], [0], [0], [1], [0, 0, 1, 1], [], []>} : vector<8x32xf32>, vector<32x128xf32>, vector<8x128xf32> -> vector<8x128xf32>
    %464 = arith.addf %460, %463 : vector<8x128xf32>
    %c1_176 = arith.constant 1 : index
    %c0_177 = arith.constant 0 : index
    %c0_178 = arith.constant 0 : index
    %465 = vector.load %arg8[%c1_176, %c0_177, %c0_178] : memref<2x1x128xf32, #tpu.memory_space<vmem>>, vector<1x1x128xf32>
    %466 = vector.shape_cast %465 : vector<1x1x128xf32> to vector<1x128xf32>
    %467 = vector.broadcast %466 : vector<1x128xf32> to vector<8x128xf32>
    %468 = arith.addf %464, %467 : vector<8x128xf32>
    %469 = vector.extract_strided_slice %468 {offsets = [0, 0], sizes = [8, 32], strides = [1, 1]} : vector<8x128xf32> to vector<8x32xf32>
    %470 = arith.negf %469 : vector<8x32xf32>
    %471 = math.exp %470 : vector<8x32xf32>
    %cst_179 = arith.constant 1.000000e+00 : f32
    %472 = vector.broadcast %cst_179 : f32 to vector<8x32xf32>
    %473 = arith.addf %472, %471 : vector<8x32xf32>
    %474 = arith.divf %472, %473 : vector<8x32xf32>
    %475 = vector.extract_strided_slice %468 {offsets = [0, 32], sizes = [8, 32], strides = [1, 1]} : vector<8x128xf32> to vector<8x32xf32>
    %476 = arith.negf %475 : vector<8x32xf32>
    %477 = math.exp %476 : vector<8x32xf32>
    %cst_180 = arith.constant 1.000000e+00 : f32
    %478 = vector.broadcast %cst_180 : f32 to vector<8x32xf32>
    %479 = arith.addf %478, %477 : vector<8x32xf32>
    %480 = arith.divf %478, %479 : vector<8x32xf32>
    %481 = vector.extract_strided_slice %468 {offsets = [0, 64], sizes = [8, 32], strides = [1, 1]} : vector<8x128xf32> to vector<8x32xf32>
    %482 = math.tanh %481 : vector<8x32xf32>
    %483 = vector.extract_strided_slice %468 {offsets = [0, 96], sizes = [8, 32], strides = [1, 1]} : vector<8x128xf32> to vector<8x32xf32>
    %484 = arith.negf %483 : vector<8x32xf32>
    %485 = math.exp %484 : vector<8x32xf32>
    %cst_181 = arith.constant 1.000000e+00 : f32
    %486 = vector.broadcast %cst_181 : f32 to vector<8x32xf32>
    %487 = arith.addf %486, %485 : vector<8x32xf32>
    %488 = arith.divf %486, %487 : vector<8x32xf32>
    %489 = arith.mulf %480, %422 : vector<8x32xf32>
    %490 = arith.mulf %474, %482 : vector<8x32xf32>
    %491 = arith.addf %489, %490 : vector<8x32xf32>
    %492 = math.tanh %491 : vector<8x32xf32>
    %493 = arith.mulf %488, %492 : vector<8x32xf32>
    %cst_182 = arith.constant 5.000000e-01 : f32
    %494 = vector.broadcast %cst_182 : f32 to vector<8x32xf32>
    %495 = arith.mulf %494, %10 : vector<8x32xf32>
    %cst_183 = arith.constant 5.000000e-01 : f32
    %496 = vector.broadcast %cst_183 : f32 to vector<8x32xf32>
    %497 = arith.mulf %496, %455 : vector<8x32xf32>
    %498 = arith.addf %495, %497 : vector<8x32xf32>
    %cst_184 = arith.constant 5.000000e-01 : f32
    %499 = vector.broadcast %cst_184 : f32 to vector<8x32xf32>
    %500 = arith.mulf %499, %10 : vector<8x32xf32>
    %cst_185 = arith.constant 5.000000e-01 : f32
    %501 = vector.broadcast %cst_185 : f32 to vector<8x32xf32>
    %502 = arith.mulf %501, %491 : vector<8x32xf32>
    %503 = arith.addf %500, %502 : vector<8x32xf32>
    %504 = arith.index_cast %426 : i32 to index
    %c0_186 = arith.constant 0 : index
    %505 = vector.load %arg15[%504, %c0_186] : memref<64x32xf32, #tpu.memory_space<vmem>>, vector<8x32xf32>
    tpu.vector_store %arg15[%504, %c0_186], %493 {strides = array<i32>} : memref<64x32xf32, #tpu.memory_space<vmem>>, vector<8x32xf32>,
    %c6_i32 = arith.constant 6 : i32
    %c8_i32_187 = arith.constant 8 : i32
    %506 = arith.muli %c6_i32, %c8_i32_187 : i32
    %507 = tpu.assume_multiple %506, 8 : i32
    %508 = arith.index_cast %507 : i32 to index
    %c0_188 = arith.constant 0 : index
    %509 = vector.load %arg14[%508, %c0_188] : memref<64x128xf32, #tpu.memory_space<vmem>>, vector<8x128xf32>
    %c0_189 = arith.constant 0 : index
    %c0_190 = arith.constant 0 : index
    %c0_191 = arith.constant 0 : index
    %510 = vector.load %arg7[%c0_189, %c0_190, %c0_191] : memref<2x32x128xf32, #tpu.memory_space<vmem>>, vector<1x32x128xf32>
    %511 = vector.shape_cast %510 : vector<1x32x128xf32> to vector<32x128xf32>
    %cst_192 = arith.constant dense<0.000000e+00> : vector<8x128xf32>
    %512 = tpu.matmul %457, %511, %cst_192 {dimension_numbers = #tpu.dot_dimension_numbers<[1], [0], [0], [1], [0, 0, 1, 1], [], []>} : vector<8x32xf32>, vector<32x128xf32>, vector<8x128xf32> -> vector<8x128xf32>
    %513 = arith.addf %509, %512 : vector<8x128xf32>
    %514 = vector.extract_strided_slice %513 {offsets = [0, 0], sizes = [8, 32], strides = [1, 1]} : vector<8x128xf32> to vector<8x32xf32>
    %515 = arith.negf %514 : vector<8x32xf32>
    %516 = math.exp %515 : vector<8x32xf32>
    %cst_193 = arith.constant 1.000000e+00 : f32
    %517 = vector.broadcast %cst_193 : f32 to vector<8x32xf32>
    %518 = arith.addf %517, %516 : vector<8x32xf32>
    %519 = arith.divf %517, %518 : vector<8x32xf32>
    %520 = vector.extract_strided_slice %513 {offsets = [0, 32], sizes = [8, 32], strides = [1, 1]} : vector<8x128xf32> to vector<8x32xf32>
    %521 = arith.negf %520 : vector<8x32xf32>
    %522 = math.exp %521 : vector<8x32xf32>
    %cst_194 = arith.constant 1.000000e+00 : f32
    %523 = vector.broadcast %cst_194 : f32 to vector<8x32xf32>
    %524 = arith.addf %523, %522 : vector<8x32xf32>
    %525 = arith.divf %523, %524 : vector<8x32xf32>
    %526 = vector.extract_strided_slice %513 {offsets = [0, 64], sizes = [8, 32], strides = [1, 1]} : vector<8x128xf32> to vector<8x32xf32>
    %527 = math.tanh %526 : vector<8x32xf32>
    %528 = vector.extract_strided_slice %513 {offsets = [0, 96], sizes = [8, 32], strides = [1, 1]} : vector<8x128xf32> to vector<8x32xf32>
    %529 = arith.negf %528 : vector<8x32xf32>
    %530 = math.exp %529 : vector<8x32xf32>
    %cst_195 = arith.constant 1.000000e+00 : f32
    %531 = vector.broadcast %cst_195 : f32 to vector<8x32xf32>
    %532 = arith.addf %531, %530 : vector<8x32xf32>
    %533 = arith.divf %531, %532 : vector<8x32xf32>
    %534 = arith.mulf %525, %498 : vector<8x32xf32>
    %535 = arith.mulf %519, %527 : vector<8x32xf32>
    %536 = arith.addf %534, %535 : vector<8x32xf32>
    %537 = math.tanh %536 : vector<8x32xf32>
    %538 = arith.mulf %533, %537 : vector<8x32xf32>
    %c1_196 = arith.constant 1 : index
    %c0_197 = arith.constant 0 : index
    %c0_198 = arith.constant 0 : index
    %539 = vector.load %arg6[%c1_196, %c0_197, %c0_198] : memref<2x32x128xf32, #tpu.memory_space<vmem>>, vector<1x32x128xf32>
    %540 = vector.shape_cast %539 : vector<1x32x128xf32> to vector<32x128xf32>
    %cst_199 = arith.constant dense<0.000000e+00> : vector<8x128xf32>
    %541 = tpu.matmul %538, %540, %cst_199 {dimension_numbers = #tpu.dot_dimension_numbers<[1], [0], [0], [1], [0, 0, 1, 1], [], []>} : vector<8x32xf32>, vector<32x128xf32>, vector<8x128xf32> -> vector<8x128xf32>
    %c1_200 = arith.constant 1 : index
    %c0_201 = arith.constant 0 : index
    %c0_202 = arith.constant 0 : index
    %542 = vector.load %arg7[%c1_200, %c0_201, %c0_202] : memref<2x32x128xf32, #tpu.memory_space<vmem>>, vector<1x32x128xf32>
    %543 = vector.shape_cast %542 : vector<1x32x128xf32> to vector<32x128xf32>
    %cst_203 = arith.constant dense<0.000000e+00> : vector<8x128xf32>
    %544 = tpu.matmul %493, %543, %cst_203 {dimension_numbers = #tpu.dot_dimension_numbers<[1], [0], [0], [1], [0, 0, 1, 1], [], []>} : vector<8x32xf32>, vector<32x128xf32>, vector<8x128xf32> -> vector<8x128xf32>
    %545 = arith.addf %541, %544 : vector<8x128xf32>
    %c1_204 = arith.constant 1 : index
    %c0_205 = arith.constant 0 : index
    %c0_206 = arith.constant 0 : index
    %546 = vector.load %arg8[%c1_204, %c0_205, %c0_206] : memref<2x1x128xf32, #tpu.memory_space<vmem>>, vector<1x1x128xf32>
    %547 = vector.shape_cast %546 : vector<1x1x128xf32> to vector<1x128xf32>
    %548 = vector.broadcast %547 : vector<1x128xf32> to vector<8x128xf32>
    %549 = arith.addf %545, %548 : vector<8x128xf32>
    %550 = vector.extract_strided_slice %549 {offsets = [0, 0], sizes = [8, 32], strides = [1, 1]} : vector<8x128xf32> to vector<8x32xf32>
    %551 = arith.negf %550 : vector<8x32xf32>
    %552 = math.exp %551 : vector<8x32xf32>
    %cst_207 = arith.constant 1.000000e+00 : f32
    %553 = vector.broadcast %cst_207 : f32 to vector<8x32xf32>
    %554 = arith.addf %553, %552 : vector<8x32xf32>
    %555 = arith.divf %553, %554 : vector<8x32xf32>
    %556 = vector.extract_strided_slice %549 {offsets = [0, 32], sizes = [8, 32], strides = [1, 1]} : vector<8x128xf32> to vector<8x32xf32>
    %557 = arith.negf %556 : vector<8x32xf32>
    %558 = math.exp %557 : vector<8x32xf32>
    %cst_208 = arith.constant 1.000000e+00 : f32
    %559 = vector.broadcast %cst_208 : f32 to vector<8x32xf32>
    %560 = arith.addf %559, %558 : vector<8x32xf32>
    %561 = arith.divf %559, %560 : vector<8x32xf32>
    %562 = vector.extract_strided_slice %549 {offsets = [0, 64], sizes = [8, 32], strides = [1, 1]} : vector<8x128xf32> to vector<8x32xf32>
    %563 = math.tanh %562 : vector<8x32xf32>
    %564 = vector.extract_strided_slice %549 {offsets = [0, 96], sizes = [8, 32], strides = [1, 1]} : vector<8x128xf32> to vector<8x32xf32>
    %565 = arith.negf %564 : vector<8x32xf32>
    %566 = math.exp %565 : vector<8x32xf32>
    %cst_209 = arith.constant 1.000000e+00 : f32
    %567 = vector.broadcast %cst_209 : f32 to vector<8x32xf32>
    %568 = arith.addf %567, %566 : vector<8x32xf32>
    %569 = arith.divf %567, %568 : vector<8x32xf32>
    %570 = arith.mulf %561, %503 : vector<8x32xf32>
    %571 = arith.mulf %555, %563 : vector<8x32xf32>
    %572 = arith.addf %570, %571 : vector<8x32xf32>
    %573 = math.tanh %572 : vector<8x32xf32>
    %574 = arith.mulf %569, %573 : vector<8x32xf32>
    %cst_210 = arith.constant 5.000000e-01 : f32
    %575 = vector.broadcast %cst_210 : f32 to vector<8x32xf32>
    %576 = arith.mulf %575, %10 : vector<8x32xf32>
    %cst_211 = arith.constant 5.000000e-01 : f32
    %577 = vector.broadcast %cst_211 : f32 to vector<8x32xf32>
    %578 = arith.mulf %577, %536 : vector<8x32xf32>
    %579 = arith.addf %576, %578 : vector<8x32xf32>
    %cst_212 = arith.constant 5.000000e-01 : f32
    %580 = vector.broadcast %cst_212 : f32 to vector<8x32xf32>
    %581 = arith.mulf %580, %10 : vector<8x32xf32>
    %cst_213 = arith.constant 5.000000e-01 : f32
    %582 = vector.broadcast %cst_213 : f32 to vector<8x32xf32>
    %583 = arith.mulf %582, %572 : vector<8x32xf32>
    %584 = arith.addf %581, %583 : vector<8x32xf32>
    %585 = arith.index_cast %507 : i32 to index
    %c0_214 = arith.constant 0 : index
    %586 = vector.load %arg15[%585, %c0_214] : memref<64x32xf32, #tpu.memory_space<vmem>>, vector<8x32xf32>
    tpu.vector_store %arg15[%585, %c0_214], %574 {strides = array<i32>} : memref<64x32xf32, #tpu.memory_space<vmem>>, vector<8x32xf32>,
    %c7_i32 = arith.constant 7 : i32
    %c8_i32_215 = arith.constant 8 : i32
    %587 = arith.muli %c7_i32, %c8_i32_215 : i32
    %588 = tpu.assume_multiple %587, 8 : i32
    %589 = arith.index_cast %588 : i32 to index
    %c0_216 = arith.constant 0 : index
    %590 = vector.load %arg14[%589, %c0_216] : memref<64x128xf32, #tpu.memory_space<vmem>>, vector<8x128xf32>
    %c0_217 = arith.constant 0 : index
    %c0_218 = arith.constant 0 : index
    %c0_219 = arith.constant 0 : index
    %591 = vector.load %arg7[%c0_217, %c0_218, %c0_219] : memref<2x32x128xf32, #tpu.memory_space<vmem>>, vector<1x32x128xf32>
    %592 = vector.shape_cast %591 : vector<1x32x128xf32> to vector<32x128xf32>
    %cst_220 = arith.constant dense<0.000000e+00> : vector<8x128xf32>
    %593 = tpu.matmul %538, %592, %cst_220 {dimension_numbers = #tpu.dot_dimension_numbers<[1], [0], [0], [1], [0, 0, 1, 1], [], []>} : vector<8x32xf32>, vector<32x128xf32>, vector<8x128xf32> -> vector<8x128xf32>
    %594 = arith.addf %590, %593 : vector<8x128xf32>
    %595 = vector.extract_strided_slice %594 {offsets = [0, 0], sizes = [8, 32], strides = [1, 1]} : vector<8x128xf32> to vector<8x32xf32>
    %596 = arith.negf %595 : vector<8x32xf32>
    %597 = math.exp %596 : vector<8x32xf32>
    %cst_221 = arith.constant 1.000000e+00 : f32
    %598 = vector.broadcast %cst_221 : f32 to vector<8x32xf32>
    %599 = arith.addf %598, %597 : vector<8x32xf32>
    %600 = arith.divf %598, %599 : vector<8x32xf32>
    %601 = vector.extract_strided_slice %594 {offsets = [0, 32], sizes = [8, 32], strides = [1, 1]} : vector<8x128xf32> to vector<8x32xf32>
    %602 = arith.negf %601 : vector<8x32xf32>
    %603 = math.exp %602 : vector<8x32xf32>
    %cst_222 = arith.constant 1.000000e+00 : f32
    %604 = vector.broadcast %cst_222 : f32 to vector<8x32xf32>
    %605 = arith.addf %604, %603 : vector<8x32xf32>
    %606 = arith.divf %604, %605 : vector<8x32xf32>
    %607 = vector.extract_strided_slice %594 {offsets = [0, 64], sizes = [8, 32], strides = [1, 1]} : vector<8x128xf32> to vector<8x32xf32>
    %608 = math.tanh %607 : vector<8x32xf32>
    %609 = vector.extract_strided_slice %594 {offsets = [0, 96], sizes = [8, 32], strides = [1, 1]} : vector<8x128xf32> to vector<8x32xf32>
    %610 = arith.negf %609 : vector<8x32xf32>
    %611 = math.exp %610 : vector<8x32xf32>
    %cst_223 = arith.constant 1.000000e+00 : f32
    %612 = vector.broadcast %cst_223 : f32 to vector<8x32xf32>
    %613 = arith.addf %612, %611 : vector<8x32xf32>
    %614 = arith.divf %612, %613 : vector<8x32xf32>
    %615 = arith.mulf %606, %579 : vector<8x32xf32>
    %616 = arith.mulf %600, %608 : vector<8x32xf32>
    %617 = arith.addf %615, %616 : vector<8x32xf32>
    %618 = math.tanh %617 : vector<8x32xf32>
    %619 = arith.mulf %614, %618 : vector<8x32xf32>
    %c1_224 = arith.constant 1 : index
    %c0_225 = arith.constant 0 : index
    %c0_226 = arith.constant 0 : index
    %620 = vector.load %arg6[%c1_224, %c0_225, %c0_226] : memref<2x32x128xf32, #tpu.memory_space<vmem>>, vector<1x32x128xf32>
    %621 = vector.shape_cast %620 : vector<1x32x128xf32> to vector<32x128xf32>
    %cst_227 = arith.constant dense<0.000000e+00> : vector<8x128xf32>
    %622 = tpu.matmul %619, %621, %cst_227 {dimension_numbers = #tpu.dot_dimension_numbers<[1], [0], [0], [1], [0, 0, 1, 1], [], []>} : vector<8x32xf32>, vector<32x128xf32>, vector<8x128xf32> -> vector<8x128xf32>
    %c1_228 = arith.constant 1 : index
    %c0_229 = arith.constant 0 : index
    %c0_230 = arith.constant 0 : index
    %623 = vector.load %arg7[%c1_228, %c0_229, %c0_230] : memref<2x32x128xf32, #tpu.memory_space<vmem>>, vector<1x32x128xf32>
    %624 = vector.shape_cast %623 : vector<1x32x128xf32> to vector<32x128xf32>
    %cst_231 = arith.constant dense<0.000000e+00> : vector<8x128xf32>
    %625 = tpu.matmul %574, %624, %cst_231 {dimension_numbers = #tpu.dot_dimension_numbers<[1], [0], [0], [1], [0, 0, 1, 1], [], []>} : vector<8x32xf32>, vector<32x128xf32>, vector<8x128xf32> -> vector<8x128xf32>
    %626 = arith.addf %622, %625 : vector<8x128xf32>
    %c1_232 = arith.constant 1 : index
    %c0_233 = arith.constant 0 : index
    %c0_234 = arith.constant 0 : index
    %627 = vector.load %arg8[%c1_232, %c0_233, %c0_234] : memref<2x1x128xf32, #tpu.memory_space<vmem>>, vector<1x1x128xf32>
    %628 = vector.shape_cast %627 : vector<1x1x128xf32> to vector<1x128xf32>
    %629 = vector.broadcast %628 : vector<1x128xf32> to vector<8x128xf32>
    %630 = arith.addf %626, %629 : vector<8x128xf32>
    %631 = vector.extract_strided_slice %630 {offsets = [0, 0], sizes = [8, 32], strides = [1, 1]} : vector<8x128xf32> to vector<8x32xf32>
    %632 = arith.negf %631 : vector<8x32xf32>
    %633 = math.exp %632 : vector<8x32xf32>
    %cst_235 = arith.constant 1.000000e+00 : f32
    %634 = vector.broadcast %cst_235 : f32 to vector<8x32xf32>
    %635 = arith.addf %634, %633 : vector<8x32xf32>
    %636 = arith.divf %634, %635 : vector<8x32xf32>
    %637 = vector.extract_strided_slice %630 {offsets = [0, 32], sizes = [8, 32], strides = [1, 1]} : vector<8x128xf32> to vector<8x32xf32>
    %638 = arith.negf %637 : vector<8x32xf32>
    %639 = math.exp %638 : vector<8x32xf32>
    %cst_236 = arith.constant 1.000000e+00 : f32
    %640 = vector.broadcast %cst_236 : f32 to vector<8x32xf32>
    %641 = arith.addf %640, %639 : vector<8x32xf32>
    %642 = arith.divf %640, %641 : vector<8x32xf32>
    %643 = vector.extract_strided_slice %630 {offsets = [0, 64], sizes = [8, 32], strides = [1, 1]} : vector<8x128xf32> to vector<8x32xf32>
    %644 = math.tanh %643 : vector<8x32xf32>
    %645 = vector.extract_strided_slice %630 {offsets = [0, 96], sizes = [8, 32], strides = [1, 1]} : vector<8x128xf32> to vector<8x32xf32>
    %646 = arith.negf %645 : vector<8x32xf32>
    %647 = math.exp %646 : vector<8x32xf32>
    %cst_237 = arith.constant 1.000000e+00 : f32
    %648 = vector.broadcast %cst_237 : f32 to vector<8x32xf32>
    %649 = arith.addf %648, %647 : vector<8x32xf32>
    %650 = arith.divf %648, %649 : vector<8x32xf32>
    %651 = arith.mulf %642, %584 : vector<8x32xf32>
    %652 = arith.mulf %636, %644 : vector<8x32xf32>
    %653 = arith.addf %651, %652 : vector<8x32xf32>
    %654 = math.tanh %653 : vector<8x32xf32>
    %655 = arith.mulf %650, %654 : vector<8x32xf32>
    %cst_238 = arith.constant 5.000000e-01 : f32
    %656 = vector.broadcast %cst_238 : f32 to vector<8x32xf32>
    %657 = arith.mulf %656, %10 : vector<8x32xf32>
    %cst_239 = arith.constant 5.000000e-01 : f32
    %658 = vector.broadcast %cst_239 : f32 to vector<8x32xf32>
    %659 = arith.mulf %658, %617 : vector<8x32xf32>
    %660 = arith.addf %657, %659 : vector<8x32xf32>
    %cst_240 = arith.constant 5.000000e-01 : f32
    %661 = vector.broadcast %cst_240 : f32 to vector<8x32xf32>
    %662 = arith.mulf %661, %10 : vector<8x32xf32>
    %cst_241 = arith.constant 5.000000e-01 : f32
    %663 = vector.broadcast %cst_241 : f32 to vector<8x32xf32>
    %664 = arith.mulf %663, %653 : vector<8x32xf32>
    %665 = arith.addf %662, %664 : vector<8x32xf32>
    %666 = arith.index_cast %588 : i32 to index
    %c0_242 = arith.constant 0 : index
    %667 = vector.load %arg15[%666, %c0_242] : memref<64x32xf32, #tpu.memory_space<vmem>>, vector<8x32xf32>
    tpu.vector_store %arg15[%666, %c0_242], %655 {strides = array<i32>} : memref<64x32xf32, #tpu.memory_space<vmem>>, vector<8x32xf32>,
    %c8_i32_243 = arith.constant 8 : i32
    %c0_244 = arith.constant 0 : index
    %c0_245 = arith.constant 0 : index
    %c0_246 = arith.constant 0 : index
    %668 = vector.load %arg12[%c0_244, %c0_245, %c0_246] : memref<2x8x32xf32, #tpu.memory_space<vmem>>, vector<1x8x32xf32>
    %669 = vector.shape_cast %668 : vector<1x8x32xf32> to vector<8x32xf32>
    %670 = vector.shape_cast %619 : vector<8x32xf32> to vector<1x8x32xf32>
    tpu.vector_store %arg12[%c0_244, %c0_245, %c0_246], %670 {strides = array<i32>} : memref<2x8x32xf32, #tpu.memory_space<vmem>>, vector<1x8x32xf32>,
    %c0_247 = arith.constant 0 : index
    %c0_248 = arith.constant 0 : index
    %c0_249 = arith.constant 0 : index
    %671 = vector.load %arg13[%c0_247, %c0_248, %c0_249] : memref<2x8x32xf32, #tpu.memory_space<vmem>>, vector<1x8x32xf32>
    %672 = vector.shape_cast %671 : vector<1x8x32xf32> to vector<8x32xf32>
    %673 = vector.shape_cast %660 : vector<8x32xf32> to vector<1x8x32xf32>
    tpu.vector_store %arg13[%c0_247, %c0_248, %c0_249], %673 {strides = array<i32>} : memref<2x8x32xf32, #tpu.memory_space<vmem>>, vector<1x8x32xf32>,
    %c1_250 = arith.constant 1 : index
    %c0_251 = arith.constant 0 : index
    %c0_252 = arith.constant 0 : index
    %674 = vector.load %arg12[%c1_250, %c0_251, %c0_252] : memref<2x8x32xf32, #tpu.memory_space<vmem>>, vector<1x8x32xf32>
    %675 = vector.shape_cast %674 : vector<1x8x32xf32> to vector<8x32xf32>
    %676 = vector.shape_cast %655 : vector<8x32xf32> to vector<1x8x32xf32>
    tpu.vector_store %arg12[%c1_250, %c0_251, %c0_252], %676 {strides = array<i32>} : memref<2x8x32xf32, #tpu.memory_space<vmem>>, vector<1x8x32xf32>,
    %c1_253 = arith.constant 1 : index
    %c0_254 = arith.constant 0 : index
    %c0_255 = arith.constant 0 : index
    %677 = vector.load %arg13[%c1_253, %c0_254, %c0_255] : memref<2x8x32xf32, #tpu.memory_space<vmem>>, vector<1x8x32xf32>
    %678 = vector.shape_cast %677 : vector<1x8x32xf32> to vector<8x32xf32>
    %679 = vector.shape_cast %665 : vector<8x32xf32> to vector<1x8x32xf32>
    tpu.vector_store %arg13[%c1_253, %c0_254, %c0_255], %679 {strides = array<i32>} : memref<2x8x32xf32, #tpu.memory_space<vmem>>, vector<1x8x32xf32>,
    %c0_256 = arith.constant 0 : index
    %c0_257 = arith.constant 0 : index
    %680 = vector.load %arg15[%c0_256, %c0_257] : memref<64x32xf32, #tpu.memory_space<vmem>>, vector<64x32xf32>
    %c0_258 = arith.constant 0 : index
    %c0_259 = arith.constant 0 : index
    %681 = vector.load %arg9[%c0_258, %c0_259] : memref<32x128xf32, #tpu.memory_space<vmem>>, vector<32x128xf32>
    %cst_260 = arith.constant dense<0.000000e+00> : vector<64x128xf32>
    %682 = tpu.matmul %680, %681, %cst_260 {dimension_numbers = #tpu.dot_dimension_numbers<[1], [0], [0], [1], [0, 0, 1, 1], [], []>} : vector<64x32xf32>, vector<32x128xf32>, vector<64x128xf32> -> vector<64x128xf32>
    %c0_261 = arith.constant 0 : index
    %c0_262 = arith.constant 0 : index
    %683 = vector.load %arg10[%c0_261, %c0_262] : memref<1x128xf32, #tpu.memory_space<vmem>>, vector<1x128xf32>
    %684 = vector.broadcast %683 : vector<1x128xf32> to vector<64x128xf32>
    %685 = arith.addf %682, %684 : vector<64x128xf32>
    %686 = vector.shape_cast %685 : vector<64x128xf32> to vector<8x8x128xf32>
    %cst_263 = arith.constant dense<0xFF800000> : vector<8x128xf32>
    %687 = vector.multi_reduction <maximumf>, %686, %cst_263 [0] : vector<8x8x128xf32> to vector<8x128xf32>
    %688 = vector.shape_cast %687 : vector<8x128xf32> to vector<1x8x128xf32>
    %689 = vector.broadcast %688 : vector<1x8x128xf32> to vector<8x8x128xf32>
    %690 = arith.subf %686, %689 : vector<8x8x128xf32>
    %691 = math.exp %690 : vector<8x8x128xf32>
    %cst_264 = arith.constant dense<0.000000e+00> : vector<8x128xf32>
    %692 = vector.multi_reduction <add>, %691, %cst_264 [0] : vector<8x8x128xf32> to vector<8x128xf32>
    %693 = vector.shape_cast %692 : vector<8x128xf32> to vector<1x8x128xf32>
    %694 = vector.broadcast %693 : vector<1x8x128xf32> to vector<8x8x128xf32>
    %695 = arith.divf %691, %694 : vector<8x8x128xf32>
    %c0_265 = arith.constant 0 : index
    %c0_266 = arith.constant 0 : index
    %c0_267 = arith.constant 0 : index
    %696 = vector.load %arg11[%c0_265, %c0_266, %c0_267] : memref<8x8x128xf32, #tpu.memory_space<vmem>>, vector<8x8x128xf32>
    tpu.vector_store %arg11[%c0_265, %c0_266, %c0_267], %695 {strides = array<i32>} : memref<8x8x128xf32, #tpu.memory_space<vmem>>, vector<8x8x128xf32>,
    return
  }
}

</mosaic_0001>

<bundles_post_ra>
// kernel: tpu_custom_call.1
= control target key start
LH: loop header
LB: loop body
LE: loop exit
PB: predicated region body
PF: predicated region fallthrough
CT: control target
= control target key end

     0   :  { %19 = vsyncpa [#allocation5], 0  ;;  %s4838_s0 = inlined_call_operand.vmem [shape: f32[8,16], index: 0, kind: input, shape index: {}]   ;;  %s4839_s1 = inlined_call_operand.vmem [shape: f32[64,32], index: 1, kind: input, shape index: {}]   ;;  %s4840_s2 = inlined_call_operand.hbm [shape: f32[16,32], index: 2, kind: input, shape index: {}]   ;;  %s4841_s3 = inlined_call_operand.hbm [shape: f32[1,32], index: 3, kind: input, shape index: {}]   ;;  %s4842_s4 = inlined_call_operand.hbm [shape: f32[16,32], index: 4, kind: input, shape index: {}]   ;;  %s4843_s5 = inlined_call_operand.hbm [shape: f32[1,32], index: 5, kind: input, shape index: {}]   ;;  %s4844_s6 = inlined_call_operand.vmem [shape: f32[2,32,128], index: 6, kind: input, shape index: {}]   ;;  %s4845_s7 = inlined_call_operand.hbm [shape: f32[2,32,128], index: 7, kind: input, shape index: {}]   ;;  %s4846_s8 = inlined_call_operand.vmem [shape: f32[2,1,128], index: 8, kind: input, shape index: {}]   ;;  %s4847_s9 = inlined_call_operand.vmem [shape: f32[32,128], index: 9, kind: input, shape index: {}]   ;;  %s4848_s10 = inlined_call_operand.vmem [shape: f32[1,128], index: 10, kind: input, shape index: {}]   ;;  %s4849_s11 = inlined_call_operand.hbm [shape: f32[8,8,128], index: 11, kind: output, shape index: {0}]   ;;  %s4850_s12 = inlined_call_operand.hbm [shape: f32[2,8,32], index: 12, kind: output, shape index: {1}]   ;;  %s4851_s13 = inlined_call_operand.hbm [shape: f32[2,8,32], index: 13, kind: output, shape index: {2}]  }
   0x1   :  { %20 = vsyncpa [#allocation8], 0 }
   0x2   :  { %21 = vsyncpa [#allocation11], 0 }
   0x3   :  { %22 = vsyncpa [#allocation6], 0 }
   0x4   :  { %23 = vsyncpa [#allocation15], 0  ;;  %s4116_s25 = smov [#allocation7]   ;;  %s4117_s27 = smov [#allocation10]  }
   0x5   :  { %s46_s26 = sshll.u32 %s4116_s25, 4  ;;  %s68_s28 = sshll.u32 %s4117_s27, 4  ;;  %s47_s26 = int_to_ptr.vmem [resolvable:$true] %s46_s26  ;;  %s69_s28 = int_to_ptr.vmem [resolvable:$true] %s68_s28 }
   0x6   :  { %s3954_s29 = scalar_lea.vmem %s47_s26, 16  ;;  %s3958_s30 = scalar_lea.vmem %s47_s26, 32 }
   0x7   :  { %p3955_p0 = scmp.ne.s32.totalorder %s47_s26, %s3954_s29  ;;  %p3959_p1 = scmp.lt.s32.totalorder %s47_s26, %s47_s26 }
   0x8   :  { %p3960_p2 = scmp.lt.s32.totalorder %s3958_s30, %s3954_s29 }
   0xa   :  { %p3961_p3 = por %p3960_p2, %p3959_p1 }
   0xc   :  { %p3962_p4 = pnand %p3961_p3, %p3955_p0 }
   0xe   :  { %3965 = shalt.err (!%p3962_p4)
}
   0xf   :  { %49 = dma.hbm_to_vmem [thread:$0]  %s4841_s3, 16, %s47_s26, [#allocation8]  }
  0x10   :  { %s3974_s16 = scalar_lea.vmem %s69_s28, 16  ;;  %s3978_s17 = scalar_lea.vmem %s69_s28, 32 }
  0x11   :  { %p3975_p5 = scmp.ne.s32.totalorder %s69_s28, %s3974_s16  ;;  %p3979_p6 = scmp.lt.s32.totalorder %s69_s28, %s69_s28 }
  0x12   :  { %p3980_p7 = scmp.lt.s32.totalorder %s3978_s17, %s3974_s16 }
  0x14   :  { %p3981_p8 = por %p3980_p7, %p3979_p6 }
  0x16   :  { %p3982_p9 = pnand %p3981_p8, %p3975_p5 }
  0x18   :  { %3985 = shalt.err (!%p3982_p9)
}
  0x19   :  { %71 = dma.hbm_to_vmem [thread:$0]  %s4843_s5, 16, %s69_s28, [#allocation11]  }
  0x1a   :  { %s4118_s20 = smov [#allocation4]  }
  0x1b   :  { %s33_s21 = sshll.u32 %s4118_s20, 4  ;;  %s34_s21 = int_to_ptr.vmem [resolvable:$true] %s33_s21 }
  0x1c   :  { %s3994_s22 = scalar_lea.vmem %s34_s21, 256  ;;  %p3999_p11 = scmp.lt.s32.totalorder %s34_s21, %s34_s21 }
  0x1d   :  { %p3995_p10 = scmp.ne.s32.totalorder %s34_s21, %s3994_s22  ;;  %p4000_p12 = scmp.lt.s32.totalorder %s3994_s22, %s3994_s22 }
  0x1f   :  { %p4001_p13 = por %p4000_p12, %p3999_p11 }
  0x21   :  { %p4002_p0 = pnand %p4001_p13, %p3995_p10 }
  0x23   :  { %4005 = shalt.err (!%p4002_p0)
}
  0x24   :  { %s4119_s3 = smov 128   ;;  %s4120_s23 = smov 8  }
  0x25   :  { %39 = dma.hbm_to_vmem [thread:$0]  %s4840_s2, 256, %s34_s21, [#allocation5], %s4119_s3, %s4119_s3, %s4120_s23  }
  0x26   :  { %s4121_s5 = smov [#allocation9]   ;;  %s4122_s27 = smov [#allocation12]  }
  0x27   :  { %s55_s26 = sshll.u32 %s4121_s5, 4  ;;  %s79_s28 = sshll.u32 %s4122_s27, 4  ;;  %s56_s26 = int_to_ptr.vmem [resolvable:$true] %s55_s26  ;;  %s80_s28 = int_to_ptr.vmem [resolvable:$true] %s79_s28 }
  0x28   :  { %s4014_s29 = scalar_lea.vmem %s56_s26, 256  ;;  %p4019_p2 = scmp.lt.s32.totalorder %s56_s26, %s56_s26 }
  0x29   :  { %p4015_p1 = scmp.ne.s32.totalorder %s56_s26, %s4014_s29  ;;  %p4020_p3 = scmp.lt.s32.totalorder %s4014_s29, %s4014_s29 }
  0x2b   :  { %p4021_p4 = por %p4020_p3, %p4019_p2 }
  0x2d   :  { %p4022_p5 = pnand %p4021_p4, %p4015_p1 }
  0x2f   :  { %4025 = shalt.err (!%p4022_p5)
}
  0x30   :  { %61 = dma.hbm_to_vmem [thread:$0]  %s4842_s4, 256, %s56_s26, [#allocation8], %s4119_s3, %s4119_s3, %s4120_s23  }
  0x31   :  { %s4034_s2 = scalar_lea.vmem %s80_s28, 1024  ;;  %p4039_p7 = scmp.lt.s32.totalorder %s80_s28, %s80_s28 }
  0x32   :  { %p4035_p6 = scmp.ne.s32.totalorder %s80_s28, %s4034_s2  ;;  %p4040_p8 = scmp.lt.s32.totalorder %s4034_s2, %s4034_s2 }
  0x34   :  { %p4041_p9 = por %p4040_p8, %p4039_p7 }
  0x36   :  { %p4042_p10 = pnand %p4041_p9, %p4035_p6 }
  0x38   :  { %4045 = shalt.err (!%p4042_p10)
}
  0x39   :  { %85 = dma.hbm_to_vmem [thread:$0]  %s4845_s7, 1024, %s80_s28, [#allocation11], %s4119_s3, %s4119_s3, %s4120_s23  }
  0x3a   :  { %4106 = dma.done.wait [#allocation5], 256  }
  0x3b   :  { %4107 = vsyncadd [#allocation5], 4294967040 }
  0x3c   :  { %4108 = dma.done.wait [#allocation8], 272  }
  0x3d   :  { %4109 = vsyncadd [#allocation8], 4294967024 }
  0x3e   :  { %4110 = dma.done.wait [#allocation11], 1040  }
  0x3f   :  { %4111 = vsyncadd [#allocation11], 4294966256  ;;  %v4123_v0 = vmov 0.0   ;;  %vm4124_vm0 = vmmov 0   ;;  %v109_v1 = vld [vmem:[#allocation4 + $0x8] sm:$0xff]  ;;  %v108_v2 = vld [vmem:[#allocation4] sm:$0xff] }
  0x40   :  { %3458 = vmatprep.subr.mxu0 %v4123_v0  ;;  %3462 = vmatprep.mubr.msk.f32.mxu0 %vm4124_vm0, %v4123_v0  ;;  %v107_v3 = vld [vmem:[%s4838_s0] sm:$0xff]  ;;  %vm117_vm1 = vcmask 130048   ;;  %v191_v5 = vld [vmem:[#allocation9] sm:$0xff]  ;;  %v279_v8 = vld [vmem:[%s4844_s6 + $0x8] sm:$0xff]  ;;  %vm289_vm2 = vcmask 261120   ;;  %s4125_s18 = smov 64  }
  0x41   :  { %3465 = vmatprep.subr.mxu1 %v4123_v0  ;;  %3469 = vmatprep.mubr.msk.f32.mxu1 %vm4124_vm0, %v4123_v0  ;;  %v192_v4 = vld [vmem:[#allocation9 + $0x8] sm:$0xff]  ;;  %v280_v7 = vld [vmem:[%s4844_s6 + $0x10] sm:$0xff]  ;;  %v275_v11 = vld [vmem:[%s4839_s1 + $0x28] sm:$0xff]  ;;  %s4126_s19 = smov 32   ;;  %s4127_s30 = smov 96  }
  0x42   :  { %3459 = vmatpush3.msra.mxu0 %v109_v1  ;;  %3466 = vmatpush3.msra.mxu1 %v192_v4  ;;  %v281_v6 = vld [vmem:[%s4844_s6 + $0x18] sm:$0xff]  ;;  %v274_v9 = vld [vmem:[%s4839_s1 + $0x20] sm:$0xff]  ;;  %v276_v14 = vld [vmem:[%s4839_s1 + $0x30] sm:$0xff] }
  0x43   :  { %3460 = vmatprep.subr.mxu0 %v4123_v0  ;;  %3467 = vmatprep.subr.mxu1 %v4123_v0  ;;  %v278_v10 = vld [vmem:[%s4844_s6] sm:$0xff]  ;;  %v271_v15 = vld [vmem:[%s4839_s1 + $0x8] sm:$0xff]  ;;  %v277_v16 = vld [vmem:[%s4839_s1 + $0x38] sm:$0xff] }
  0x44   :  { %3461 = vmatpush3.msra.mxu0 %v108_v2  ;;  %3468 = vmatpush3.msra.mxu1 %v191_v5  ;;  %v4255_v12 = vld [vmem:[#allocation12 + $0x18] sm:$0xff]  ;;  %v4273_v17 = vld [vmem:[#allocation12 + $0x10] sm:$0xff]  ;;  %v4279_v18 = vld [vmem:[#allocation12 + $0x8] sm:$0xff] }
  0x45   :  { %3463 = vmatmul.mubr.msk.f32.vlgmr.msra.gmra.mxu0 %vm117_vm1, %v107_v3  ;;  %3470 = vmatmul.mubr.msk.f32.vlgmr.msra.gmra.mxu1 %vm117_vm1, %v107_v3  ;;  %v270_v13 = vld [vmem:[%s4839_s1] sm:$0xff]  ;;  %v3198_v20 = vld [vmem:[#allocation7] ss:$0 sm:$0xff]  ;;  %v4295_v26 = vld [vmem:[#allocation12 + $0x30] sm:$0xff] }
  0x46   :  { %3776 = vmatprep.subr.mxu1 %v281_v6  ;;  %3472 = vmatprep.subr.mxu0 %v281_v6  ;;  %v4288_v19 = vld [vmem:[#allocation12] sm:$0xff]  ;;  %v4292_v23 = vld [vmem:[#allocation12 + $0x38] sm:$0xff]  ;;  %v4301_v28 = vld [vmem:[#allocation12 + $0x28] sm:$0xff] }
  0x47   :  { %3780 = vmatpush3.msra.mxu1 %v281_v6  ;;  %3473 = vmatpush3.msra.mxu0 %v281_v6  ;;  %v4305_v29 = vld [vmem:[#allocation12 + $0x20] sm:$0xff]  ;;  %v4333_v35 = vld [vmem:[%s4846_s8] ss:$0 sm:$0xff]  ;;  %v3200_v44 = vld [vmem:[#allocation10] ss:$0 sm:$0xff] }
  0x48   :  { %3777 = vmatprep.subr.mxu1 %v280_v7  ;;  %3474 = vmatprep.subr.mxu0 %v280_v7  ;;  %v4352_v56 = vld [vmem:[%s4844_s6 + $0x38] sm:$0xff]  ;;  %v272_v57 = vld [vmem:[%s4839_s1 + $0x10] sm:$0xff]  ;;  %v4372_v60 = vld [vmem:[%s4844_s6 + $0x28] sm:$0xff] }
  0x49   :  { %3781 = vmatpush3.msra.mxu1 %v280_v7  ;;  %3475 = vmatpush3.msra.mxu0 %v280_v7  ;;  %v273_v58 = vld [vmem:[%s4839_s1 + $0x18] sm:$0xff]  ;;  %v4365_v59 = vld [vmem:[%s4844_s6 + $0x30] sm:$0xff]  ;;  %v4381_v61 = vld [vmem:[%s4844_s6 + $0x20] sm:$0xff] }
  0x4a   :  { %3778 = vmatprep.subr.mxu1 %v279_v8  ;;  %3486 = vmatprep.mubr.msk.f32.mxu1 %vm289_vm2, %v274_v9 }
  0x4b   :  { %3782 = vmatpush3.msra.mxu1 %v279_v8  ;;  %3476 = vmatprep.subr.mxu0 %v279_v8 }
  0x4c   :  { %3779 = vmatprep.subr.mxu1 %v278_v10  ;;  %3477 = vmatpush3.msra.mxu0 %v279_v8  ;;  %v4421_v8 = vld [vmem:[%s4846_s8 + $0x1] ss:$0 sm:$0xff] }
  0x4d   :  { %3783 = vmatpush3.msra.mxu1 %v278_v10  ;;  %3478 = vmatprep.subr.mxu0 %v278_v10 }
  0x4e   :  { %3487 = vmatmul.mubr.msk.f32.vlgmr.msra.gmra.mxu1 %vm289_vm2, %v275_v11  ;;  %3492 = vmatprep.subr.mxu1 %v4123_v0 }
  0x4f   :  { %3493 = vmatpush3.msra.mxu1 %v4255_v12  ;;  %3479 = vmatpush3.msra.mxu0 %v278_v10 }
  0x50   :  { %3480 = vmatprep.mubr.msk.f32.mxu0 %vm289_vm2, %v270_v13  ;;  %3489 = vmatprep.mubr.msk.f32.mxu1 %vm289_vm2, %v276_v14 }
  0x51   :  { %3494 = vmatprep.subr.mxu1 %v4123_v0  ;;  %3481 = vmatmul.mubr.msk.f32.vlgmr.msra.gmra.mxu0 %vm289_vm2, %v271_v15 }
  0x52   :  { %3490 = vmatmul.mubr.msk.f32.gmra.mxu1 %vm289_vm2, %v277_v16  ;;  %3514 = vmatprep.subr.mxu0 %v4123_v0 }
  0x53   :  { %3495 = vmatpush3.msra.mxu1 %v4273_v17  ;;  %3500 = vmatprep.mubr.msk.f32.mxu1 %vm4124_vm0, %v4123_v0 }
  0x54   :  { %3496 = vmatprep.subr.mxu1 %v4123_v0  ;;  %3515 = vmatpush3.msra.mxu0 %v4352_v56 }
  0x55   :  { %3497 = vmatpush3.msra.mxu1 %v4279_v18  ;;  %3483 = vmatprep.mubr.msk.f32.mxu0 %vm289_vm2, %v272_v57 }
  0x56   :  { %3498 = vmatprep.subr.mxu1 %v4123_v0  ;;  %3516 = vmatprep.subr.mxu0 %v4123_v0 }
  0x57   :  { %3499 = vmatpush3.msra.mxu1 %v4288_v19  ;;  %3484 = vmatmul.mubr.msk.f32.gmra.mxu0 %vm289_vm2, %v273_v58 }
  0x58   :  { %3503 = vmatprep.subr.mxu1 %v4123_v0  ;;  %3517 = vmatpush3.msra.mxu0 %v4365_v59 }
  0x59   :  { %3522 = vmatprep.mubr.msk.f32.mxu0 %vm4124_vm0, %v4123_v0  ;;  %3518 = vmatprep.subr.mxu0 %v4123_v0 }
  0x5a   :  { %3519 = vmatpush3.msra.mxu0 %v4372_v60 }
  0x5b   :  { %3520 = vmatprep.subr.mxu0 %v4123_v0 }
  0x5c   :  { %3521 = vmatpush3.msra.mxu0 %v4381_v61 }
  0x5d   :  { %3536 = vmatprep.subr.mxu0 %v4123_v0 }
 0x105   :  { %v187_v21 = vpop.f32.mrf.mxu0  ;;  %v266_v24 = vpop.f32.mrf.mxu1 }
 0x106   :  { %v188_v22 = vadd.f32 %v3198_v20, %v187_v21  ;;  %v4341_v45 = vadd.f32 %v3200_v44, %v266_v24 }
 0x107   :  { %v3464_v25 = vpop.f32.mrf.mxu0  ;;  %v3471_v27 = vpop.f32.mrf.mxu1 }
 0x108   :  { %3501 = vmatmul.mubr.msk.f32.vlgmr.msra.gmra.mxu1 %vm289_vm2, %v188_v22 }
 0x109   :  { %3504 = vmatpush3.msra.mxu1 %v4292_v23  ;;  %3511 = vmatprep.mubr.msk.f32.mxu1 %vm4124_vm0, %v4123_v0 }
 0x10a   :  { %3505 = vmatprep.subr.mxu1 %v4123_v0 }
 0x10b   :  { %3506 = vmatpush3.msra.mxu1 %v4295_v26 }
 0x10c   :  { %3507 = vmatprep.subr.mxu1 %v4123_v0 }
 0x10d   :  { %3508 = vmatpush3.msra.mxu1 %v4301_v28 }
 0x10e   :  { %3509 = vmatprep.subr.mxu1 %v4123_v0  ;;  %v4322_v30 = vpop.f32.mrf.mxu1 }
 0x10f   :  { %3510 = vmatpush3.msra.mxu1 %v4305_v29 }
 0x110   :  { %3512 = vmatmul.mubr.msk.f32.vlgmr.msra.gmra.mxu1 %vm289_vm2, %v188_v22  ;;  %3525 = vmatprep.subr.mxu1 %v4123_v0  ;;  %v4324_v31 = vpop.f32.mrf.mxu1  ;;  %v4427_v22 = vmul.f32 0.5, %v4341_v45 }
 0x111   :  { %3526 = vmatpush3.msra.mxu1 %v4255_v12  ;;  %3533 = vmatprep.mubr.msk.f32.mxu1 %vm4124_vm0, %v4123_v0  ;;  %v4326_v32 = vpop.f32.mrf.mxu0 }
 0x112   :  { %3527 = vmatprep.subr.mxu1 %v4123_v0  ;;  %v4328_v33 = vpop.f32.mrf.mxu1  ;;  %v386_v6 = vadd.f32 %v4326_v32, %v4333_v35 }
 0x113   :  { %3528 = vmatpush3.msra.mxu1 %v4273_v17  ;;  %v380_v34 = vpop.f32.mrf.mxu0 }
 0x114   :  { %3529 = vmatprep.subr.mxu1 %v4123_v0  ;;  %v4335_v36 = vpop.f32.mrf.mxu1  ;;  %v381_v37 = vadd.f32 %v4333_v35, %v380_v34 }
 0x115   :  { %3530 = vmatpush3.msra.mxu1 %v4279_v18 }
 0x116   :  { %3531 = vmatprep.subr.mxu1 %v4123_v0 }
 0x117   :  { %3532 = vmatpush3.msra.mxu1 %v4288_v19  ;;  %v4412_v4 = vpop.f32.mrf.mxu0 }
 0x118   :  { %3547 = vmatprep.subr.mxu1 %v4123_v0 }
 0x119   :  { %v4414_v5 = vpop.f32.mrf.mxu0 }
 0x1c8   :  { %v501_v38 = vpop.f32.mrf.mxu1 }
 0x1c9   :  { %v505_v39 = vadd.f32 %v501_v38, %v381_v37 }
 0x1ca   :  { %v3502_v40 = vpop.f32.mrf.mxu1 }
 0x1cb   :  { %3799 = vtanh.f32 %v505_v39  ;;  %v3212_v46 = vmul.f32 -1.442695, %v505_v39 }
 0x1cd   :  { %3801 = vpow2.f32 %v3212_v46 }
 0x1d0   :  { %v4338_v41 = vpop.f32.mrf.mxu1 }
 0x1d2   :  { %v3513_v42 = vpop.f32.mrf.mxu1 }
 0x1d8   :  { %v3800_v43 = vpop.eup %3799 }
 0x1d9   :  { %519 = vrot.lane.b32.xlu0 %v3800_v43, %s4125_s18 }
 0x1da   :  { %v3802_v47 = vpop.eup %3801 }
 0x1db   :  { %v509_v48 = vadd.f32 1.0, %v3802_v47 }
 0x1dd   :  { %514 = vrot.lane.b32.xlu0 %v4341_v45, %s4126_s19  ;;  %3803 = vrcp.f32 %v509_v48 }
 0x1ea   :  { %v3804_v49 = vpop.eup %3803 }
 0x24b   :  { %v520_v50 = vpop.permute.xlu0 %519 }
 0x24c   :  { %v522_v51 = vmul.f32 %v3804_v49, %v520_v50 }
 0x24e   :  { %524 = vrot.lane.b32.xlu1 %v522_v51, %s4126_s19 }
 0x24f   :  { %v4346_v52 = vpop.permute.xlu0 %514 }
 0x250   :  { %v517_v53 = vmul.f32 %v3804_v49, %v4346_v52 }
 0x2c0   :  { %v525_v54 = vpop.permute.xlu1 %524 }
 0x2c1   :  { %v527_v55 = vadd.f32 %v525_v54, %v517_v53 }
 0x2c3   :  { %3805 = vtanh.f32 %v527_v55  ;;  %v723_v63 = vmul.f32 0.5, %v527_v55 }
 0x2d0   :  { %v3806_v62 = vpop.eup %3805 }
 0x2d1   :  { %530 = vrot.lane.b32.xlu1 %v3806_v62, %s4125_s18 }
 0x2d5   :  { %725 = vrot.lane.b32.xlu1 %v723_v63, %s4127_s30 }
 0x343   :  { %v531_v1 = vpop.permute.xlu1 %530 }
 0x344   :  { %v533_v2 = vmul.f32 %v3804_v49, %v531_v1 }
 0x346   :  { %615 = vrot.lane.b32.xlu0 %v533_v2, %s4126_s19 }
 0x347   :  { %v726_v21 = vpop.permute.xlu1 %725 }
 0x348   :  { %v728_v24 = vadd.f32 %v726_v21, %v4427_v22 }
 0x3b8   :  { %v616_v3 = vpop.permute.xlu0 %615 }
 0x3b9   :  { %3523 = vmatmul.mubr.msk.f32.vlgmr.msra.gmra.mxu0 %vm289_vm2, %v616_v3  ;;  %3534 = vmatmul.mubr.msk.f32.vlgmr.msra.gmra.mxu1 %vm289_vm2, %v616_v3 }
 0x3ba   :  { %3548 = vmatpush3.msra.mxu1 %v4352_v56  ;;  %3537 = vmatpush3.msra.mxu0 %v4292_v23 }
 0x3bb   :  { %3549 = vmatprep.subr.mxu1 %v4123_v0  ;;  %3538 = vmatprep.subr.mxu0 %v4123_v0 }
 0x3bc   :  { %3550 = vmatpush3.msra.mxu1 %v4365_v59  ;;  %3539 = vmatpush3.msra.mxu0 %v4295_v26 }
 0x3bd   :  { %3551 = vmatprep.subr.mxu1 %v4123_v0  ;;  %3540 = vmatprep.subr.mxu0 %v4123_v0 }
 0x3be   :  { %3552 = vmatpush3.msra.mxu1 %v4372_v60  ;;  %3541 = vmatpush3.msra.mxu0 %v4301_v28 }
 0x3bf   :  { %3553 = vmatprep.subr.mxu1 %v4123_v0  ;;  %3542 = vmatprep.subr.mxu0 %v4123_v0 }
 0x3c0   :  { %3554 = vmatpush3.msra.mxu1 %v4381_v61  ;;  %3555 = vmatprep.mubr.msk.f32.mxu1 %vm4124_vm0, %v4123_v0 }
 0x3c1   :  { %3543 = vmatpush3.msra.mxu0 %v4305_v29  ;;  %3544 = vmatprep.mubr.msk.f32.mxu0 %vm4124_vm0, %v4123_v0 }
 0x3c2   :  { %3558 = vmatprep.subr.mxu0 %v4123_v0  ;;  %3569 = vmatprep.subr.mxu1 %v4123_v0 }
 0x479   :  { %v685_v7 = vpop.f32.mrf.mxu0  ;;  %v812_v9 = vpop.f32.mrf.mxu1 }
 0x47a   :  { %v686_v10 = vadd.f32 %v685_v7, %v4338_v41  ;;  %v816_v11 = vadd.f32 %v812_v9, %v386_v6 }
 0x47b   :  { %v3524_v13 = vpop.f32.mrf.mxu0  ;;  %v3535_v14 = vpop.f32.mrf.mxu1 }
 0x47c   :  { %v697_v15 = vadd.f32 %v4421_v8, %v686_v10  ;;  %3807 = vtanh.f32 %v816_v11  ;;  %v3223_v25 = vmul.f32 -1.442695, %v816_v11 }
 0x47e   :  { %3809 = vtanh.f32 %v697_v15  ;;  %v3221_v27 = vmul.f32 -1.442695, %v697_v15 }
 0x47f   :  { %3811 = vpow2.f32 %v3223_v25 }
 0x480   :  { %3813 = vpow2.f32 %v3221_v27 }
 0x489   :  { %v3808_v16 = vpop.eup %3807 }
 0x48a   :  { %830 = vrot.lane.b32.xlu1 %v3808_v16, %s4125_s18 }
 0x48b   :  { %v3810_v20 = vpop.eup %3809 }
 0x48c   :  { %707 = vrot.lane.b32.xlu0 %v3810_v20, %s4125_s18  ;;  %v3812_v32 = vpop.eup %3811  ;;  %v391_v20 = vadd.f32 %v4333_v35, %v4414_v5 }
 0x48d   :  { %v3814_v34 = vpop.eup %3813  ;;  %v820_v37 = vadd.f32 1.0, %v3812_v32 }
 0x48e   :  { %v701_v38 = vadd.f32 1.0, %v3814_v34 }
 0x48f   :  { %3815 = vrcp.f32 %v820_v37 }
 0x490   :  { %825 = vrot.lane.b32.xlu0 %v728_v24, %s4126_s19  ;;  %3817 = vrcp.f32 %v701_v38 }
 0x49c   :  { %v3816_v39 = vpop.eup %3815 }
 0x49d   :  { %v3818_v42 = vpop.eup %3817 }
 0x49e   :  { %v705_v49 = vmul.f32 %v3818_v42, %v4346_v52 }
 0x4fc   :  { %v831_v40 = vpop.permute.xlu1 %830 }
 0x4fd   :  { %v833_v41 = vmul.f32 %v3816_v39, %v831_v40 }
 0x4fe   :  { %v708_v43 = vpop.permute.xlu0 %707 }
 0x4ff   :  { %v710_v44 = vmul.f32 %v3818_v42, %v708_v43  ;;  %835 = vrot.lane.b32.xlu0 %v833_v41, %s4126_s19 }
 0x501   :  { %712 = vrot.lane.b32.xlu1 %v710_v44, %s4126_s19 }
 0x502   :  { %v826_v45 = vpop.permute.xlu0 %825 }
 0x503   :  { %v828_v46 = vmul.f32 %v3816_v39, %v826_v45 }
 0x571   :  { %v836_v47 = vpop.permute.xlu0 %835 }
 0x572   :  { %v838_v48 = vadd.f32 %v836_v47, %v828_v46 }
 0x573   :  { %v713_v50 = vpop.permute.xlu1 %712 }
 0x574   :  { %3819 = vtanh.f32 %v838_v48  ;;  %v715_v51 = vadd.f32 %v713_v50, %v705_v49  ;;  %v1036_v52 = vmul.f32 0.5, %v838_v48 }
 0x576   :  { %3821 = vtanh.f32 %v715_v51  ;;  %v729_v63 = vmul.f32 0.5, %v715_v51 }
 0x581   :  { %v3820_v53 = vpop.eup %3819 }
 0x582   :  { %841 = vrot.lane.b32.xlu0 %v3820_v53, %s4125_s18 }
 0x583   :  { %v3822_v54 = vpop.eup %3821 }
 0x584   :  { %718 = vrot.lane.b32.xlu1 %v3822_v54, %s4125_s18 }
 0x5f4   :  { %v842_v55 = vpop.permute.xlu0 %841 }
 0x5f5   :  { %v844_v57 = vmul.f32 %v3816_v39, %v842_v55 }
 0x5f6   :  { %v719_v58 = vpop.permute.xlu1 %718 }
 0x5f7   :  { %v721_v62 = vmul.f32 %v3818_v42, %v719_v58  ;;  %926 = vrot.lane.b32.xlu0 %v844_v57, %s4126_s19 }
 0x5f9   :  { %736 = vrot.lane.b32.xlu1 %v721_v62, %s4126_s19 }
 0x5fd   :  { %731 = vrot.lane.b32.xlu1 %v729_v63, %s4127_s30 }
 0x601   :  { %1038 = vrot.lane.b32.xlu1 %v1036_v52, %s4127_s30 }
 0x669   :  { %v927_v1 = vpop.permute.xlu0 %926 }
 0x66a   :  { %3556 = vmatmul.mubr.msk.f32.vlgmr.msra.gmra.mxu1 %vm289_vm2, %v927_v1 }
 0x66b   :  { %v737_v2 = vpop.permute.xlu1 %736  ;;  %3570 = vmatpush3.msra.mxu1 %v4292_v23  ;;  %3577 = vmatprep.mubr.msk.f32.mxu1 %vm4124_vm0, %v4123_v0 }
 0x66c   :  { %739 = vst.msk [vmem:[#allocation3] sm:$0xff] %vm289_vm2, %v737_v2  ;;  %3545 = vmatmul.mubr.msk.f32.vlgmr.msra.gmra.mxu0 %vm289_vm2, %v737_v2  ;;  %3571 = vmatprep.subr.mxu1 %v4123_v0 }
 0x66d   :  { %3559 = vmatpush3.msra.mxu0 %v4255_v12  ;;  %3566 = vmatprep.mubr.msk.f32.mxu0 %vm4124_vm0, %v4123_v0 }
 0x66e   :  { %3560 = vmatprep.subr.mxu0 %v4123_v0  ;;  %3572 = vmatpush3.msra.mxu1 %v4295_v26 }
 0x66f   :  { %3561 = vmatpush3.msra.mxu0 %v4273_v17  ;;  %v732_v3 = vpop.permute.xlu1 %731  ;;  %3573 = vmatprep.subr.mxu1 %v4123_v0 }
 0x670   :  { %3562 = vmatprep.subr.mxu0 %v4123_v0  ;;  %v734_v6 = vadd.f32 %v732_v3, %v4427_v22  ;;  %3574 = vmatpush3.msra.mxu1 %v4301_v28 }
 0x671   :  { %3563 = vmatpush3.msra.mxu0 %v4279_v18  ;;  %3575 = vmatprep.subr.mxu1 %v4123_v0 }
 0x672   :  { %3564 = vmatprep.subr.mxu0 %v4123_v0  ;;  %1016 = vrot.lane.b32.xlu1 %v734_v6, %s4126_s19 }
 0x673   :  { %3565 = vmatpush3.msra.mxu0 %v4288_v19  ;;  %v1039_v7 = vpop.permute.xlu1 %1038  ;;  %3576 = vmatpush3.msra.mxu1 %v4305_v29 }
 0x674   :  { %3567 = vmatmul.mubr.msk.f32.vlgmr.msra.gmra.mxu0 %vm289_vm2, %v927_v1  ;;  %v1041_v9 = vadd.f32 %v1039_v7, %v4427_v22  ;;  %3580 = vmatprep.subr.mxu0 %v4123_v0 }
 0x675   :  { %3581 = vmatpush3.msra.mxu0 %v4352_v56  ;;  %3591 = vmatprep.subr.mxu1 %v4123_v0 }
 0x676   :  { %1139 = vrot.lane.b32.xlu1 %v1041_v9, %s4126_s19  ;;  %3582 = vmatprep.subr.mxu0 %v4123_v0 }
 0x677   :  { %3583 = vmatpush3.msra.mxu0 %v4365_v59  ;;  %3588 = vmatprep.mubr.msk.f32.mxu0 %vm4124_vm0, %v4123_v0 }
 0x678   :  { %3584 = vmatprep.subr.mxu0 %v4123_v0 }
 0x679   :  { %3585 = vmatpush3.msra.mxu0 %v4372_v60 }
 0x67a   :  { %3586 = vmatprep.subr.mxu0 %v4123_v0 }
 0x67b   :  { %3587 = vmatpush3.msra.mxu0 %v4381_v61 }
 0x67c   :  { %3602 = vmatprep.subr.mxu0 %v4123_v0 }
 0x6e4   :  { %v1017_v47 = vpop.permute.xlu1 %1016 }
 0x6e8   :  { %v1140_v51 = vpop.permute.xlu1 %1139 }
 0x72a   :  { %v996_v10 = vpop.f32.mrf.mxu1 }
 0x72c   :  { %v921_v11 = vpop.f32.mrf.mxu0  ;;  %v3557_v13 = vpop.f32.mrf.mxu1 }
 0x72d   :  { %v997_v14 = vadd.f32 %v996_v10, %v921_v11  ;;  %v396_v13 = vadd.f32 %v4412_v4, %v4333_v35 }
 0x72e   :  { %v3546_v15 = vpop.f32.mrf.mxu0 }
 0x72f   :  { %v1007_v16 = vadd.f32 %v4421_v8, %v997_v14 }
 0x731   :  { %3823 = vtanh.f32 %v1007_v16  ;;  %v3232_v34 = vmul.f32 -1.442695, %v1007_v16 }
 0x734   :  { %v1126_v21 = vpop.f32.mrf.mxu0 }
 0x735   :  { %v1130_v24 = vadd.f32 %v1126_v21, %v391_v20 }
 0x736   :  { %v3568_v25 = vpop.f32.mrf.mxu0 }
 0x737   :  { %3825 = vtanh.f32 %v1130_v24  ;;  %v3234_v37 = vmul.f32 -1.442695, %v1130_v24 }
 0x738   :  { %3827 = vpow2.f32 %v3232_v34 }
 0x739   :  { %3829 = vpow2.f32 %v3234_v37 }
 0x73e   :  { %v3824_v27 = vpop.eup %3823 }
 0x73f   :  { %1021 = vrot.lane.b32.xlu0 %v3824_v27, %s4125_s18 }
 0x744   :  { %v3826_v32 = vpop.eup %3825 }
 0x745   :  { %1144 = vrot.lane.b32.xlu0 %v3826_v32, %s4125_s18  ;;  %v3828_v38 = vpop.eup %3827 }
 0x746   :  { %v1011_v39 = vadd.f32 1.0, %v3828_v38  ;;  %v3830_v40 = vpop.eup %3829 }
 0x747   :  { %v1134_v41 = vadd.f32 1.0, %v3830_v40 }
 0x748   :  { %3831 = vrcp.f32 %v1011_v39 }
 0x749   :  { %3833 = vrcp.f32 %v1134_v41 }
 0x755   :  { %v3832_v5 = vpop.eup %3831 }
 0x756   :  { %v3834_v44 = vpop.eup %3833  ;;  %v1019_v48 = vmul.f32 %v3832_v5, %v1017_v47 }
 0x757   :  { %v1142_v53 = vmul.f32 %v3834_v44, %v1140_v51 }
 0x7b1   :  { %v1022_v42 = vpop.permute.xlu0 %1021 }
 0x7b2   :  { %v1024_v43 = vmul.f32 %v3832_v5, %v1022_v42 }
 0x7b4   :  { %1026 = vrot.lane.b32.xlu0 %v1024_v43, %s4126_s19 }
 0x7b7   :  { %v1145_v45 = vpop.permute.xlu0 %1144 }
 0x7b8   :  { %v1147_v46 = vmul.f32 %v3834_v44, %v1145_v45 }
 0x7ba   :  { %1149 = vrot.lane.b32.xlu0 %v1147_v46, %s4126_s19 }
 0x826   :  { %v1027_v49 = vpop.permute.xlu0 %1026 }
 0x827   :  { %v1029_v50 = vadd.f32 %v1027_v49, %v1019_v48 }
 0x829   :  { %3835 = vtanh.f32 %v1029_v50  ;;  %v1042_v52 = vmul.f32 0.5, %v1029_v50 }
 0x82c   :  { %v1150_v54 = vpop.permute.xlu0 %1149 }
 0x82d   :  { %v1152_v55 = vadd.f32 %v1150_v54, %v1142_v53 }
 0x82f   :  { %3837 = vtanh.f32 %v1152_v55  ;;  %v1350_v3 = vmul.f32 0.5, %v1152_v55 }
 0x836   :  { %v3836_v57 = vpop.eup %3835 }
 0x837   :  { %1032 = vrot.lane.b32.xlu1 %v3836_v57, %s4125_s18 }
 0x83c   :  { %v3838_v58 = vpop.eup %3837 }
 0x83d   :  { %1155 = vrot.lane.b32.xlu0 %v3838_v58, %s4125_s18 }
 0x8a9   :  { %v1033_v62 = vpop.permute.xlu1 %1032 }
 0x8aa   :  { %v1035_v63 = vmul.f32 %v3832_v5, %v1033_v62 }
 0x8ac   :  { %1049 = vrot.lane.b32.xlu1 %v1035_v63, %s4126_s19 }
 0x8af   :  { %v1156_v1 = vpop.permute.xlu0 %1155 }
 0x8b0   :  { %v1158_v2 = vmul.f32 %v3834_v44, %v1156_v1  ;;  %1044 = vrot.lane.b32.xlu1 %v1042_v52, %s4127_s30 }
 0x8b2   :  { %1240 = vrot.lane.b32.xlu0 %v1158_v2, %s4126_s19 }
 0x8b6   :  { %1352 = vrot.lane.b32.xlu0 %v1350_v3, %s4127_s30 }
 0x91e   :  { %v1050_v6 = vpop.permute.xlu1 %1049 }
 0x91f   :  { %1053 = vst.msk [vmem:[#allocation3 + $0x8] sm:$0xff] %vm289_vm2, %v1050_v6  ;;  %3578 = vmatmul.mubr.msk.f32.vlgmr.msra.gmra.mxu1 %vm289_vm2, %v1050_v6 }
 0x920   :  { %3592 = vmatpush3.msra.mxu1 %v4255_v12  ;;  %3599 = vmatprep.mubr.msk.f32.mxu1 %vm4124_vm0, %v4123_v0 }
 0x921   :  { %3593 = vmatprep.subr.mxu1 %v4123_v0 }
 0x922   :  { %3594 = vmatpush3.msra.mxu1 %v4273_v17  ;;  %v1045_v27 = vpop.permute.xlu1 %1044 }
 0x923   :  { %3595 = vmatprep.subr.mxu1 %v4123_v0  ;;  %v1047_v37 = vadd.f32 %v1045_v27, %v4427_v22 }
 0x924   :  { %v1241_v7 = vpop.permute.xlu0 %1240  ;;  %3596 = vmatpush3.msra.mxu1 %v4279_v18 }
 0x925   :  { %3589 = vmatmul.mubr.msk.f32.vlgmr.msra.gmra.mxu0 %vm289_vm2, %v1241_v7  ;;  %3597 = vmatprep.subr.mxu1 %v4123_v0 }
 0x926   :  { %3598 = vmatpush3.msra.mxu1 %v4288_v19  ;;  %3603 = vmatpush3.msra.mxu0 %v4292_v23 }
 0x927   :  { %3600 = vmatmul.mubr.msk.f32.vlgmr.msra.gmra.mxu1 %vm289_vm2, %v1241_v7  ;;  %3613 = vmatprep.subr.mxu1 %v4123_v0 }
 0x928   :  { %3604 = vmatprep.subr.mxu0 %v4123_v0  ;;  %3614 = vmatpush3.msra.mxu1 %v4352_v56  ;;  %v1353_v34 = vpop.permute.xlu0 %1352 }
 0x929   :  { %3605 = vmatpush3.msra.mxu0 %v4295_v26  ;;  %3615 = vmatprep.subr.mxu1 %v4123_v0  ;;  %v1355_v4 = vadd.f32 %v1353_v34, %v4427_v22 }
 0x92a   :  { %3606 = vmatprep.subr.mxu0 %v4123_v0  ;;  %3616 = vmatpush3.msra.mxu1 %v4365_v59 }
 0x92b   :  { %3607 = vmatpush3.msra.mxu0 %v4301_v28  ;;  %3617 = vmatprep.subr.mxu1 %v4123_v0 }
 0x92c   :  { %3608 = vmatprep.subr.mxu0 %v4123_v0  ;;  %3618 = vmatpush3.msra.mxu1 %v4372_v60 }
 0x92d   :  { %3609 = vmatpush3.msra.mxu0 %v4305_v29  ;;  %3619 = vmatprep.subr.mxu1 %v4123_v0 }
 0x92e   :  { %3610 = vmatprep.mubr.msk.f32.mxu0 %vm4124_vm0, %v4123_v0  ;;  %3620 = vmatpush3.msra.mxu1 %v4381_v61 }
 0x92f   :  { %3621 = vmatprep.mubr.msk.f32.mxu1 %vm4124_vm0, %v4123_v0  ;;  %3624 = vmatprep.subr.mxu0 %v4123_v0 }
 0x930   :  { %3635 = vmatprep.subr.mxu1 %v4123_v0 }
 0x9df   :  { %v1235_v9 = vpop.f32.mrf.mxu1 }
 0x9e1   :  { %v3579_v10 = vpop.f32.mrf.mxu1 }
 0x9e5   :  { %v1310_v11 = vpop.f32.mrf.mxu0 }
 0x9e6   :  { %v1311_v14 = vadd.f32 %v1310_v11, %v1235_v9 }
 0x9e7   :  { %v3590_v15 = vpop.f32.mrf.mxu0  ;;  %v1440_v16 = vpop.f32.mrf.mxu1 }
 0x9e8   :  { %v1321_v20 = vadd.f32 %v4421_v8, %v1311_v14  ;;  %v1444_v21 = vadd.f32 %v1440_v16, %v396_v13 }
 0x9e9   :  { %v3601_v24 = vpop.f32.mrf.mxu1 }
 0x9ea   :  { %3839 = vtanh.f32 %v1321_v20  ;;  %v3243_v38 = vmul.f32 -1.442695, %v1321_v20  ;;  %v3245_v39 = vmul.f32 -1.442695, %v1444_v21 }
 0x9eb   :  { %3841 = vtanh.f32 %v1444_v21  ;;  %v401_v21 = vadd.f32 %v4333_v35, %v4324_v31 }
 0x9ec   :  { %3843 = vpow2.f32 %v3243_v38 }
 0x9ed   :  { %3845 = vpow2.f32 %v3245_v39 }
 0x9f7   :  { %v3840_v25 = vpop.eup %3839 }
 0x9f8   :  { %v3842_v32 = vpop.eup %3841  ;;  %1335 = vrot.lane.b32.xlu1 %v3840_v25, %s4125_s18 }
 0x9f9   :  { %1458 = vrot.lane.b32.xlu0 %v3842_v32, %s4125_s18  ;;  %v3844_v40 = vpop.eup %3843 }
 0x9fa   :  { %v3846_v41 = vpop.eup %3845  ;;  %v1325_v5 = vadd.f32 1.0, %v3844_v40 }
 0x9fb   :  { %v1448_v42 = vadd.f32 1.0, %v3846_v41 }
 0x9fc   :  { %1330 = vrot.lane.b32.xlu1 %v1047_v37, %s4126_s19  ;;  %3847 = vrcp.f32 %v1325_v5 }
 0x9fd   :  { %1453 = vrot.lane.b32.xlu0 %v1355_v4, %s4126_s19  ;;  %3849 = vrcp.f32 %v1448_v42 }
 0xa09   :  { %v3848_v43 = vpop.eup %3847 }
 0xa0a   :  { %v3850_v45 = vpop.eup %3849 }
 0xa6a   :  { %v1336_v44 = vpop.permute.xlu1 %1335 }
 0xa6b   :  { %v1459_v46 = vpop.permute.xlu0 %1458  ;;  %v1338_v47 = vmul.f32 %v3848_v43, %v1336_v44 }
 0xa6c   :  { %v1461_v48 = vmul.f32 %v3850_v45, %v1459_v46 }
 0xa6d   :  { %1340 = vrot.lane.b32.xlu1 %v1338_v47, %s4126_s19 }
 0xa6e   :  { %1463 = vrot.lane.b32.xlu0 %v1461_v48, %s4126_s19  ;;  %v1331_v49 = vpop.permute.xlu1 %1330 }
 0xa6f   :  { %v1454_v50 = vpop.permute.xlu0 %1453  ;;  %v1333_v51 = vmul.f32 %v3848_v43, %v1331_v49 }
 0xa70   :  { %v1456_v53 = vmul.f32 %v3850_v45, %v1454_v50 }
 0xadf   :  { %v1341_v54 = vpop.permute.xlu1 %1340 }
 0xae0   :  { %v1464_v55 = vpop.permute.xlu0 %1463  ;;  %v1343_v57 = vadd.f32 %v1341_v54, %v1333_v51 }
 0xae1   :  { %v1466_v58 = vadd.f32 %v1464_v55, %v1456_v53 }
 0xae2   :  { %3851 = vtanh.f32 %v1343_v57  ;;  %v1356_v6 = vmul.f32 0.5, %v1343_v57 }
 0xae3   :  { %3853 = vtanh.f32 %v1466_v58  ;;  %v1664_v7 = vmul.f32 0.5, %v1466_v58 }
 0xaef   :  { %v3852_v62 = vpop.eup %3851 }
 0xaf0   :  { %v3854_v63 = vpop.eup %3853  ;;  %1346 = vrot.lane.b32.xlu1 %v3852_v62, %s4125_s18 }
 0xaf1   :  { %1469 = vrot.lane.b32.xlu0 %v3854_v63, %s4125_s18 }
 0xb62   :  { %v1347_v52 = vpop.permute.xlu1 %1346 }
 0xb63   :  { %v1470_v1 = vpop.permute.xlu0 %1469  ;;  %v1349_v2 = vmul.f32 %v3848_v43, %v1347_v52 }
 0xb64   :  { %v1472_v3 = vmul.f32 %v3850_v45, %v1470_v1 }
 0xb65   :  { %1363 = vrot.lane.b32.xlu1 %v1349_v2, %s4126_s19 }
 0xb66   :  { %1554 = vrot.lane.b32.xlu0 %v1472_v3, %s4126_s19 }
 0xb69   :  { %1358 = vrot.lane.b32.xlu1 %v1356_v6, %s4127_s30 }
 0xb6d   :  { %1666 = vrot.lane.b32.xlu1 %v1664_v7, %s4127_s30 }
 0xbd7   :  { %v1364_v9 = vpop.permute.xlu1 %1363 }
 0xbd8   :  { %v1555_v10 = vpop.permute.xlu0 %1554  ;;  %1367 = vst.msk [vmem:[#allocation3 + $0x10] sm:$0xff] %vm289_vm2, %v1364_v9  ;;  %3611 = vmatmul.mubr.msk.f32.vlgmr.msra.gmra.mxu0 %vm289_vm2, %v1364_v9 }
 0xbd9   :  { %3622 = vmatmul.mubr.msk.f32.vlgmr.msra.gmra.mxu1 %vm289_vm2, %v1555_v10  ;;  %3625 = vmatpush3.msra.mxu0 %v4255_v12 }
 0xbda   :  { %3626 = vmatprep.subr.mxu0 %v4123_v0  ;;  %3632 = vmatprep.mubr.msk.f32.mxu0 %vm4124_vm0, %v4123_v0 }
 0xbdb   :  { %3627 = vmatpush3.msra.mxu0 %v4273_v17  ;;  %v1359_v11 = vpop.permute.xlu1 %1358  ;;  %3636 = vmatpush3.msra.mxu1 %v4292_v23 }
 0xbdc   :  { %3628 = vmatprep.subr.mxu0 %v4123_v0  ;;  %v1361_v13 = vadd.f32 %v1359_v11, %v4427_v22  ;;  %3637 = vmatprep.subr.mxu1 %v4123_v0 }
 0xbdd   :  { %3629 = vmatpush3.msra.mxu0 %v4279_v18  ;;  %3638 = vmatpush3.msra.mxu1 %v4295_v26 }
 0xbde   :  { %3630 = vmatprep.subr.mxu0 %v4123_v0  ;;  %1644 = vrot.lane.b32.xlu1 %v1361_v13, %s4126_s19 }
 0xbdf   :  { %3631 = vmatpush3.msra.mxu0 %v4288_v19  ;;  %v1667_v14 = vpop.permute.xlu1 %1666  ;;  %3639 = vmatprep.subr.mxu1 %v4123_v0 }
 0xbe0   :  { %3633 = vmatmul.mubr.msk.f32.vlgmr.msra.gmra.mxu0 %vm289_vm2, %v1555_v10  ;;  %v1669_v23 = vadd.f32 %v1667_v14, %v4427_v22  ;;  %3640 = vmatpush3.msra.mxu1 %v4301_v28 }
 0xbe1   :  { %3641 = vmatprep.subr.mxu1 %v4123_v0  ;;  %3646 = vmatprep.subr.mxu0 %v4123_v0 }
 0xbe2   :  { %1767 = vrot.lane.b32.xlu1 %v1669_v23, %s4126_s19  ;;  %3642 = vmatpush3.msra.mxu1 %v4305_v29 }
 0xbe3   :  { %3647 = vmatpush3.msra.mxu0 %v4352_v56  ;;  %3643 = vmatprep.mubr.msk.f32.mxu1 %vm4124_vm0, %v4123_v0 }
 0xbe4   :  { %3648 = vmatprep.subr.mxu0 %v4123_v0  ;;  %3657 = vmatprep.subr.mxu1 %v4123_v0 }
 0xbe5   :  { %3649 = vmatpush3.msra.mxu0 %v4365_v59  ;;  %3654 = vmatprep.mubr.msk.f32.mxu0 %vm4124_vm0, %v4123_v0 }
 0xbe6   :  { %3650 = vmatprep.subr.mxu0 %v4123_v0 }
 0xbe7   :  { %3651 = vmatpush3.msra.mxu0 %v4372_v60 }
 0xbe8   :  { %3652 = vmatprep.subr.mxu0 %v4123_v0 }
 0xbe9   :  { %3653 = vmatpush3.msra.mxu0 %v4381_v61 }
 0xbea   :  { %3668 = vmatprep.subr.mxu0 %v4123_v0 }
 0xc50   :  { %v1645_v46 = vpop.permute.xlu1 %1644 }
 0xc54   :  { %v1768_v50 = vpop.permute.xlu1 %1767 }
 0xc98   :  { %v1549_v26 = vpop.f32.mrf.mxu0 }
 0xc99   :  { %v1624_v28 = vpop.f32.mrf.mxu1 }
 0xc9a   :  { %v1625_v29 = vadd.f32 %v1624_v28, %v1549_v26  ;;  %v3612_v15 = vpop.f32.mrf.mxu0 }
 0xc9b   :  { %v3623_v16 = vpop.f32.mrf.mxu1 }
 0xc9c   :  { %v1635_v20 = vadd.f32 %v4421_v8, %v1625_v29 }
 0xc9e   :  { %3855 = vtanh.f32 %v1635_v20  ;;  %v3254_v37 = vmul.f32 -1.442695, %v1635_v20 }
 0xca0   :  { %v1754_v24 = vpop.f32.mrf.mxu0 }
 0xca1   :  { %v1758_v25 = vadd.f32 %v1754_v24, %v401_v21 }
 0xca2   :  { %v3634_v27 = vpop.f32.mrf.mxu0 }
 0xca3   :  { %3857 = vtanh.f32 %v1758_v25  ;;  %v3256_v4 = vmul.f32 -1.442695, %v1758_v25 }
 0xca4   :  { %3859 = vpow2.f32 %v3254_v37 }
 0xca5   :  { %3861 = vpow2.f32 %v3256_v4 }
 0xcab   :  { %v3856_v32 = vpop.eup %3855 }
 0xcac   :  { %1649 = vrot.lane.b32.xlu0 %v3856_v32, %s4125_s18 }
 0xcb0   :  { %v3858_v34 = vpop.eup %3857 }
 0xcb1   :  { %1772 = vrot.lane.b32.xlu0 %v3858_v34, %s4125_s18  ;;  %v3860_v38 = vpop.eup %3859 }
 0xcb2   :  { %v1639_v39 = vadd.f32 1.0, %v3860_v38  ;;  %v3862_v40 = vpop.eup %3861 }
 0xcb3   :  { %v1762_v41 = vadd.f32 1.0, %v3862_v40 }
 0xcb4   :  { %3863 = vrcp.f32 %v1639_v39 }
 0xcb5   :  { %3865 = vrcp.f32 %v1762_v41 }
 0xcc1   :  { %v3864_v31 = vpop.eup %3863 }
 0xcc2   :  { %v3866_v43 = vpop.eup %3865  ;;  %v1647_v47 = vmul.f32 %v3864_v31, %v1645_v46  ;;  %v4643_v46 = vld [vmem:[#allocation12 + $0x20] sm:$0xff] }
 0xcc3   :  { %v1770_v51 = vmul.f32 %v3866_v43, %v1768_v50 }
 0xd1e   :  { %v1650_v5 = vpop.permute.xlu0 %1649 }
 0xd1f   :  { %v1652_v42 = vmul.f32 %v3864_v31, %v1650_v5  ;;  %v4631_v5 = vld [vmem:[#allocation12 + $0x38] sm:$0xff] }
 0xd21   :  { %1654 = vrot.lane.b32.xlu0 %v1652_v42, %s4126_s19  ;;  %v4633_v42 = vld [vmem:[#allocation12 + $0x30] sm:$0xff] }
 0xd23   :  { %v1773_v44 = vpop.permute.xlu0 %1772 }
 0xd24   :  { %v1775_v45 = vmul.f32 %v3866_v43, %v1773_v44  ;;  %v4637_v44 = vld [vmem:[#allocation12 + $0x28] sm:$0xff] }
 0xd26   :  { %1777 = vrot.lane.b32.xlu0 %v1775_v45, %s4126_s19 }
 0xd93   :  { %v1655_v48 = vpop.permute.xlu0 %1654 }
 0xd94   :  { %v1657_v49 = vadd.f32 %v1655_v48, %v1647_v47 }
 0xd96   :  { %3867 = vtanh.f32 %v1657_v49  ;;  %v1670_v63 = vmul.f32 0.5, %v1657_v49 }
 0xd98   :  { %v1778_v53 = vpop.permute.xlu0 %1777 }
 0xd99   :  { %v1780_v54 = vadd.f32 %v1778_v53, %v1770_v51 }
 0xd9b   :  { %3869 = vtanh.f32 %v1780_v54  ;;  %v1978_v2 = vmul.f32 0.5, %v1780_v54  ;;  %v4653_v54 = vld [vmem:[#allocation12 + $0x18] sm:$0xff] }
 0xda3   :  { %v3868_v55 = vpop.eup %3867 }
 0xda4   :  { %1660 = vrot.lane.b32.xlu1 %v3868_v55, %s4125_s18 }
 0xda8   :  { %v3870_v57 = vpop.eup %3869 }
 0xda9   :  { %1783 = vrot.lane.b32.xlu0 %v3870_v57, %s4125_s18 }
 0xe16   :  { %v1661_v58 = vpop.permute.xlu1 %1660 }
 0xe17   :  { %v1663_v62 = vmul.f32 %v3864_v31, %v1661_v58  ;;  %v4657_v58 = vld [vmem:[#allocation12 + $0x10] sm:$0xff] }
 0xe19   :  { %1677 = vrot.lane.b32.xlu1 %v1663_v62, %s4126_s19  ;;  %v4662_v62 = vld [vmem:[#allocation12 + $0x8] sm:$0xff] }
 0xe1b   :  { %v1784_v52 = vpop.permute.xlu0 %1783 }
 0xe1c   :  { %v1786_v1 = vmul.f32 %v3866_v43, %v1784_v52 }
 0xe1d   :  { %1672 = vrot.lane.b32.xlu1 %v1670_v63, %s4127_s30 }
 0xe1e   :  { %1868 = vrot.lane.b32.xlu0 %v1786_v1, %s4126_s19  ;;  %v4670_v1 = vld [vmem:[#allocation12] sm:$0xff] }
 0xe22   :  { %1980 = vrot.lane.b32.xlu0 %v1978_v2, %s4127_s30 }
 0xe8b   :  { %v1678_v3 = vpop.permute.xlu1 %1677 }
 0xe8c   :  { %1681 = vst.msk [vmem:[#allocation3 + $0x18] sm:$0xff] %vm289_vm2, %v1678_v3  ;;  %3644 = vmatmul.mubr.msk.f32.vlgmr.msra.gmra.mxu1 %vm289_vm2, %v1678_v3 }
 0xe8d   :  { %3658 = vmatpush3.msra.mxu1 %v4255_v12  ;;  %3665 = vmatprep.mubr.msk.f32.mxu1 %vm4124_vm0, %v4123_v0 }
 0xe8e   :  { %3659 = vmatprep.subr.mxu1 %v4123_v0 }
 0xe8f   :  { %3660 = vmatpush3.msra.mxu1 %v4273_v17  ;;  %v1673_v13 = vpop.permute.xlu1 %1672 }
 0xe90   :  { %3661 = vmatprep.subr.mxu1 %v4123_v0  ;;  %v1869_v6 = vpop.permute.xlu0 %1868  ;;  %v1675_v23 = vadd.f32 %v1673_v13, %v4427_v22 }
 0xe91   :  { %3662 = vmatpush3.msra.mxu1 %v4279_v18  ;;  %3655 = vmatmul.mubr.msk.f32.vlgmr.msra.gmra.mxu0 %vm289_vm2, %v1869_v6 }
 0xe92   :  { %3663 = vmatprep.subr.mxu1 %v4123_v0  ;;  %3676 = vmatprep.mubr.msk.f32.mxu0 %vm4124_vm0, %v4123_v0 }
 0xe93   :  { %3664 = vmatpush3.msra.mxu1 %v4288_v19  ;;  %3669 = vmatpush3.msra.mxu0 %v4631_v5 }
 0xe94   :  { %3666 = vmatmul.mubr.msk.f32.vlgmr.msra.gmra.mxu1 %vm289_vm2, %v1869_v6  ;;  %3679 = vmatprep.subr.mxu1 %v4123_v0  ;;  %v1981_v14 = vpop.permute.xlu0 %1980 }
 0xe95   :  { %3680 = vmatpush3.msra.mxu1 %v4352_v56  ;;  %3687 = vmatprep.mubr.msk.f32.mxu1 %vm4124_vm0, %v4123_v0  ;;  %v406_v56 = vadd.f32 %v4322_v30, %v4333_v35  ;;  %v1983_v30 = vadd.f32 %v1981_v14, %v4427_v22 }
 0xe96   :  { %3681 = vmatprep.subr.mxu1 %v4123_v0  ;;  %3670 = vmatprep.subr.mxu0 %v4123_v0 }
 0xe97   :  { %3682 = vmatpush3.msra.mxu1 %v4365_v59  ;;  %3671 = vmatpush3.msra.mxu0 %v4633_v42 }
 0xe98   :  { %3683 = vmatprep.subr.mxu1 %v4123_v0  ;;  %3672 = vmatprep.subr.mxu0 %v4123_v0 }
 0xe99   :  { %3684 = vmatpush3.msra.mxu1 %v4372_v60  ;;  %3673 = vmatpush3.msra.mxu0 %v4637_v44 }
 0xe9a   :  { %3685 = vmatprep.subr.mxu1 %v4123_v0  ;;  %3674 = vmatprep.subr.mxu0 %v4123_v0 }
 0xe9b   :  { %3686 = vmatpush3.msra.mxu1 %v4381_v61  ;;  %3675 = vmatpush3.msra.mxu0 %v4643_v46 }
 0xe9c   :  { %3701 = vmatprep.subr.mxu1 %v4123_v0  ;;  %3690 = vmatprep.subr.mxu0 %v4123_v0 }
 0xf4c   :  { %v1863_v12 = vpop.f32.mrf.mxu1 }
 0xf4e   :  { %v3645_v17 = vpop.f32.mrf.mxu1 }
 0xf51   :  { %v1938_v18 = vpop.f32.mrf.mxu0 }
 0xf52   :  { %v1939_v19 = vadd.f32 %v1938_v18, %v1863_v12 }
 0xf53   :  { %v3656_v7 = vpop.f32.mrf.mxu0 }
 0xf54   :  { %v1949_v59 = vadd.f32 %v4421_v8, %v1939_v19  ;;  %v2068_v9 = vpop.f32.mrf.mxu1  ;;  %v4695_v7 = vld [vmem:[%s4846_s8] ss:$0 sm:$0xff] }
 0xf55   :  { %v2072_v10 = vadd.f32 %v2068_v9, %v406_v56 }
 0xf56   :  { %3871 = vtanh.f32 %v1949_v59  ;;  %v3667_v60 = vpop.f32.mrf.mxu1  ;;  %v3265_v35 = vmul.f32 -1.442695, %v1949_v59  ;;  %v411_v59 = vadd.f32 %v4695_v7, %v4335_v36 }
 0xf57   :  { %3873 = vtanh.f32 %v2072_v10  ;;  %v3267_v26 = vmul.f32 -1.442695, %v2072_v10 }
 0xf58   :  { %3875 = vpow2.f32 %v3265_v35 }
 0xf59   :  { %3877 = vpow2.f32 %v3267_v26 }
 0xf63   :  { %v3872_v11 = vpop.eup %3871 }
 0xf64   :  { %v3874_v61 = vpop.eup %3873  ;;  %1963 = vrot.lane.b32.xlu1 %v3872_v11, %s4125_s18 }
 0xf65   :  { %2086 = vrot.lane.b32.xlu0 %v3874_v61, %s4125_s18  ;;  %v3876_v28 = vpop.eup %3875 }
 0xf66   :  { %v3878_v29 = vpop.eup %3877  ;;  %v1953_v15 = vadd.f32 1.0, %v3876_v28 }
 0xf67   :  { %v2076_v16 = vadd.f32 1.0, %v3878_v29 }
 0xf68   :  { %1958 = vrot.lane.b32.xlu1 %v1675_v23, %s4126_s19  ;;  %3879 = vrcp.f32 %v1953_v15 }
 0xf69   :  { %2081 = vrot.lane.b32.xlu0 %v1983_v30, %s4126_s19  ;;  %3881 = vrcp.f32 %v2076_v16 }
 0xf75   :  { %v3880_v20 = vpop.eup %3879 }
 0xf76   :  { %v3882_v24 = vpop.eup %3881 }
 0xfd6   :  { %v1964_v21 = vpop.permute.xlu1 %1963 }
 0xfd7   :  { %v2087_v25 = vpop.permute.xlu0 %2086  ;;  %v1966_v27 = vmul.f32 %v3880_v20, %v1964_v21 }
 0xfd8   :  { %v2089_v32 = vmul.f32 %v3882_v24, %v2087_v25 }
 0xfd9   :  { %1968 = vrot.lane.b32.xlu1 %v1966_v27, %s4126_s19 }
 0xfda   :  { %2091 = vrot.lane.b32.xlu0 %v2089_v32, %s4126_s19  ;;  %v1959_v34 = vpop.permute.xlu1 %1958 }
 0xfdb   :  { %v2082_v37 = vpop.permute.xlu0 %2081  ;;  %v1961_v4 = vmul.f32 %v3880_v20, %v1959_v34 }
 0xfdc   :  { %v2084_v38 = vmul.f32 %v3882_v24, %v2082_v37 }
0x104b   :  { %v1969_v39 = vpop.permute.xlu1 %1968 }
0x104c   :  { %v2092_v40 = vpop.permute.xlu0 %2091  ;;  %v1971_v41 = vadd.f32 %v1969_v39, %v1961_v4  ;;  %v3282_v4 = vld [vmem:[%s4844_s6 + $0x38] sm:$0xff] }
0x104d   :  { %v2094_v31 = vadd.f32 %v2092_v40, %v2084_v38  ;;  %v3281_v40 = vld [vmem:[%s4844_s6 + $0x30] sm:$0xff] }
0x104e   :  { %3883 = vtanh.f32 %v1971_v41  ;;  %v1984_v51 = vmul.f32 0.5, %v1971_v41  ;;  %v3280_v41 = vld [vmem:[%s4844_s6 + $0x28] sm:$0xff] }
0x104f   :  { %3885 = vtanh.f32 %v2094_v31  ;;  %v2292_v53 = vmul.f32 0.5, %v2094_v31  ;;  %v3279_v31 = vld [vmem:[%s4844_s6 + $0x20] sm:$0xff] }
0x105b   :  { %v3884_v43 = vpop.eup %3883 }
0x105c   :  { %v3886_v45 = vpop.eup %3885  ;;  %1974 = vrot.lane.b32.xlu1 %v3884_v43, %s4125_s18 }
0x105d   :  { %2097 = vrot.lane.b32.xlu0 %v3886_v45, %s4125_s18 }
0x10ce   :  { %v1975_v47 = vpop.permute.xlu1 %1974 }
0x10cf   :  { %v2098_v48 = vpop.permute.xlu0 %2097  ;;  %v1977_v49 = vmul.f32 %v3880_v20, %v1975_v47 }
0x10d0   :  { %v2100_v50 = vmul.f32 %v3882_v24, %v2098_v48 }
0x10d1   :  { %1991 = vrot.lane.b32.xlu1 %v1977_v49, %s4126_s19 }
0x10d2   :  { %2182 = vrot.lane.b32.xlu0 %v2100_v50, %s4126_s19 }
0x10d5   :  { %1986 = vrot.lane.b32.xlu1 %v1984_v51, %s4127_s30 }
0x10d9   :  { %2294 = vrot.lane.b32.xlu1 %v2292_v53, %s4127_s30 }
0x1143   :  { %v1992_v55 = vpop.permute.xlu1 %1991 }
0x1144   :  { %v2183_v57 = vpop.permute.xlu0 %2182  ;;  %1995 = vst.msk [vmem:[#allocation3 + $0x20] sm:$0xff] %vm289_vm2, %v1992_v55  ;;  %3677 = vmatmul.mubr.msk.f32.vlgmr.msra.gmra.mxu0 %vm289_vm2, %v1992_v55 }
0x1145   :  { %3688 = vmatmul.mubr.msk.f32.vlgmr.msra.gmra.mxu1 %vm289_vm2, %v2183_v57  ;;  %3691 = vmatpush3.msra.mxu0 %v4653_v54 }
0x1146   :  { %3692 = vmatprep.subr.mxu0 %v4123_v0  ;;  %3698 = vmatprep.mubr.msk.f32.mxu0 %vm4124_vm0, %v4123_v0 }
0x1147   :  { %3693 = vmatpush3.msra.mxu0 %v4657_v58  ;;  %v1987_v63 = vpop.permute.xlu1 %1986  ;;  %3702 = vmatpush3.msra.mxu1 %v4631_v5 }
0x1148   :  { %3694 = vmatprep.subr.mxu0 %v4123_v0  ;;  %v1989_v52 = vadd.f32 %v1987_v63, %v4427_v22  ;;  %3703 = vmatprep.subr.mxu1 %v4123_v0 }
0x1149   :  { %3695 = vmatpush3.msra.mxu0 %v4662_v62  ;;  %3704 = vmatpush3.msra.mxu1 %v4633_v42 }
0x114a   :  { %3696 = vmatprep.subr.mxu0 %v4123_v0  ;;  %2272 = vrot.lane.b32.xlu1 %v1989_v52, %s4126_s19 }
0x114b   :  { %3697 = vmatpush3.msra.mxu0 %v4670_v1  ;;  %v2295_v2 = vpop.permute.xlu1 %2294  ;;  %3705 = vmatprep.subr.mxu1 %v4123_v0 }
0x114c   :  { %3699 = vmatmul.mubr.msk.f32.vlgmr.msra.gmra.mxu0 %vm289_vm2, %v2183_v57  ;;  %v2297_v3 = vadd.f32 %v2295_v2, %v4427_v22  ;;  %3706 = vmatpush3.msra.mxu1 %v4637_v44 }
0x114d   :  { %3707 = vmatprep.subr.mxu1 %v4123_v0  ;;  %3712 = vmatprep.subr.mxu0 %v4123_v0 }
0x114e   :  { %2395 = vrot.lane.b32.xlu1 %v2297_v3, %s4126_s19  ;;  %3708 = vmatpush3.msra.mxu1 %v4643_v46 }
0x114f   :  { %3709 = vmatprep.mubr.msk.f32.mxu1 %vm4124_vm0, %v4123_v0  ;;  %3723 = vmatprep.subr.mxu1 %v4123_v0 }
0x1150   :  { %3720 = vmatprep.mubr.msk.f32.mxu0 %vm4124_vm0, %v4123_v0  ;;  %3713 = vmatpush3.msra.mxu0 %v3282_v4 }
0x1151   :  { %3714 = vmatprep.subr.mxu0 %v4123_v0 }
0x1152   :  { %3715 = vmatpush3.msra.mxu0 %v3281_v40 }
0x1153   :  { %3716 = vmatprep.subr.mxu0 %v4123_v0 }
0x1154   :  { %3717 = vmatpush3.msra.mxu0 %v3280_v41 }
0x1155   :  { %3718 = vmatprep.subr.mxu0 %v4123_v0 }
0x1156   :  { %3719 = vmatpush3.msra.mxu0 %v3279_v31 }
0x1157   :  { %3734 = vmatprep.subr.mxu0 %v4123_v0 }
0x11bc   :  { %v2273_v20 = vpop.permute.xlu1 %2272 }
0x11c0   :  { %v2396_v27 = vpop.permute.xlu1 %2395 }
0x1204   :  { %v2177_v6 = vpop.f32.mrf.mxu0 }
0x1205   :  { %v2252_v12 = vpop.f32.mrf.mxu1 }
0x1206   :  { %v2253_v17 = vadd.f32 %v2252_v12, %v2177_v6  ;;  %v3678_v18 = vpop.f32.mrf.mxu0 }
0x1207   :  { %v3689_v19 = vpop.f32.mrf.mxu1 }
0x1208   :  { %v2263_v56 = vadd.f32 %v4421_v8, %v2253_v17 }
0x120a   :  { %3887 = vtanh.f32 %v2263_v56  ;;  %v3276_v8 = vmul.f32 -1.442695, %v2263_v56 }
0x120c   :  { %v2382_v9 = vpop.f32.mrf.mxu0 }
0x120d   :  { %v2386_v10 = vadd.f32 %v2382_v9, %v411_v59 }
0x120e   :  { %v3700_v60 = vpop.f32.mrf.mxu0 }
0x120f   :  { %3889 = vtanh.f32 %v2386_v10  ;;  %v3278_v61 = vmul.f32 -1.442695, %v2386_v10 }
0x1210   :  { %3891 = vpow2.f32 %v3276_v8 }
0x1211   :  { %3893 = vpow2.f32 %v3278_v61 }
0x1217   :  { %v3888_v11 = vpop.eup %3887 }
0x1218   :  { %2277 = vrot.lane.b32.xlu0 %v3888_v11, %s4125_s18 }
0x121c   :  { %v3890_v13 = vpop.eup %3889 }
0x121d   :  { %2400 = vrot.lane.b32.xlu0 %v3890_v13, %s4125_s18  ;;  %v3892_v14 = vpop.eup %3891 }
0x121e   :  { %v2267_v23 = vadd.f32 1.0, %v3892_v14  ;;  %v3894_v30 = vpop.eup %3893 }
0x121f   :  { %v2390_v35 = vadd.f32 1.0, %v3894_v30 }
0x1220   :  { %3895 = vrcp.f32 %v2267_v23 }
0x1221   :  { %3897 = vrcp.f32 %v2390_v35 }
0x122d   :  { %v3896_v36 = vpop.eup %3895 }
0x122e   :  { %v3898_v29 = vpop.eup %3897  ;;  %v2275_v21 = vmul.f32 %v3896_v36, %v2273_v20 }
0x122f   :  { %v2398_v32 = vmul.f32 %v3898_v29, %v2396_v27 }
0x128a   :  { %v2278_v26 = vpop.permute.xlu0 %2277 }
0x128b   :  { %v2280_v28 = vmul.f32 %v3896_v36, %v2278_v26 }
0x128d   :  { %2282 = vrot.lane.b32.xlu0 %v2280_v28, %s4126_s19  ;;  %v2956_v28 = vld [vmem:[%s4847_s9 + $0x18] sm:$0xff] }
0x128f   :  { %v2401_v15 = vpop.permute.xlu0 %2400 }
0x1290   :  { %v2403_v16 = vmul.f32 %v3898_v29, %v2401_v15 }
0x1292   :  { %2405 = vrot.lane.b32.xlu0 %v2403_v16, %s4126_s19 }
0x12ff   :  { %v2283_v24 = vpop.permute.xlu0 %2282 }
0x1300   :  { %v2285_v25 = vadd.f32 %v2283_v24, %v2275_v21 }
0x1302   :  { %3899 = vtanh.f32 %v2285_v25  ;;  %v2298_v47 = vmul.f32 0.5, %v2285_v25 }
0x1304   :  { %v2406_v34 = vpop.permute.xlu0 %2405 }
0x1305   :  { %v2408_v37 = vadd.f32 %v2406_v34, %v2398_v32  ;;  %v2955_v32 = vld [vmem:[%s4847_s9 + $0x10] sm:$0xff] }
0x1307   :  { %3901 = vtanh.f32 %v2408_v37  ;;  %v2606_v50 = vmul.f32 0.5, %v2408_v37  ;;  %v2945_v37 = vld [vmem:[#allocation3] sm:$0xff] }
0x130f   :  { %v3900_v38 = vpop.eup %3899 }
0x1310   :  { %2288 = vrot.lane.b32.xlu1 %v3900_v38, %s4125_s18 }
0x1314   :  { %v3902_v39 = vpop.eup %3901 }
0x1315   :  { %2411 = vrot.lane.b32.xlu0 %v3902_v39, %s4125_s18  ;;  %v2953_v39 = vld [vmem:[%s4847_s9] sm:$0xff] }
0x1382   :  { %v2289_v43 = vpop.permute.xlu1 %2288 }
0x1383   :  { %v2291_v45 = vmul.f32 %v3896_v36, %v2289_v43  ;;  %v2948_v43 = vld [vmem:[#allocation3 + $0x18] sm:$0xff] }
0x1385   :  { %2305 = vrot.lane.b32.xlu1 %v2291_v45, %s4126_s19  ;;  %v2949_v45 = vld [vmem:[#allocation3 + $0x20] sm:$0xff] }
0x1387   :  { %v2412_v48 = vpop.permute.xlu0 %2411 }
0x1388   :  { %v2414_v49 = vmul.f32 %v3898_v29, %v2412_v48 }
0x1389   :  { %2300 = vrot.lane.b32.xlu1 %v2298_v47, %s4127_s30 }
0x138a   :  { %2496 = vrot.lane.b32.xlu0 %v2414_v49, %s4126_s19 }
0x138e   :  { %2608 = vrot.lane.b32.xlu0 %v2606_v50, %s4127_s30 }
0x13f7   :  { %v2306_v51 = vpop.permute.xlu1 %2305 }
0x13f8   :  { %2309 = vst.msk [vmem:[#allocation3 + $0x28] sm:$0xff] %vm289_vm2, %v2306_v51  ;;  %3710 = vmatmul.mubr.msk.f32.vlgmr.msra.gmra.mxu1 %vm289_vm2, %v2306_v51 }
0x13f9   :  { %3724 = vmatpush3.msra.mxu1 %v4653_v54  ;;  %3731 = vmatprep.mubr.msk.f32.mxu1 %vm4124_vm0, %v4123_v0 }
0x13fa   :  { %3725 = vmatprep.subr.mxu1 %v4123_v0 }
0x13fb   :  { %3726 = vmatpush3.msra.mxu1 %v4657_v58 }
0x13fc   :  { %3727 = vmatprep.subr.mxu1 %v4123_v0  ;;  %v2497_v53 = vpop.permute.xlu0 %2496 }
0x13fd   :  { %3728 = vmatpush3.msra.mxu1 %v4662_v62  ;;  %3721 = vmatmul.mubr.msk.f32.vlgmr.msra.gmra.mxu0 %vm289_vm2, %v2497_v53 }
0x13fe   :  { %3729 = vmatprep.subr.mxu1 %v4123_v0  ;;  %3735 = vmatpush3.msra.mxu0 %v4631_v5 }
0x13ff   :  { %3730 = vmatpush3.msra.mxu1 %v4670_v1  ;;  %3736 = vmatprep.subr.mxu0 %v4123_v0  ;;  %v2301_v1 = vpop.permute.xlu1 %2300  ;;  %v2950_v47 = vld [vmem:[#allocation3 + $0x28] sm:$0xff] }
0x1400   :  { %3732 = vmatmul.mubr.msk.f32.vlgmr.msra.gmra.mxu1 %vm289_vm2, %v2497_v53  ;;  %3745 = vmatprep.subr.mxu1 %v4123_v0  ;;  %v2609_v3 = vpop.permute.xlu0 %2608  ;;  %v2303_v6 = vadd.f32 %v2301_v1, %v4427_v22 }
0x1401   :  { %3746 = vmatpush3.msra.mxu1 %v3282_v4  ;;  %3737 = vmatpush3.msra.mxu0 %v4633_v42  ;;  %v2954_v4 = vld [vmem:[%s4847_s9 + $0x8] sm:$0xff]  ;;  %s4128_s9 = smov [#allocation14]  }
0x1402   :  { %3747 = vmatprep.subr.mxu1 %v4123_v0  ;;  %3738 = vmatprep.subr.mxu0 %v4123_v0 }
0x1403   :  { %3748 = vmatpush3.msra.mxu1 %v3281_v40  ;;  %3739 = vmatpush3.msra.mxu0 %v4637_v44  ;;  %v4756_v44 = vld [vmem:[%s4846_s8 + $0x1] ss:$0 sm:$0xff] }
0x1404   :  { %3749 = vmatprep.subr.mxu1 %v4123_v0  ;;  %3740 = vmatprep.subr.mxu0 %v4123_v0 }
0x1405   :  { %3750 = vmatpush3.msra.mxu1 %v3280_v41  ;;  %3741 = vmatpush3.msra.mxu0 %v4643_v46  ;;  %v416_v46 = vadd.f32 %v4695_v7, %v4328_v33  ;;  %v2611_v33 = vadd.f32 %v2609_v3, %v4427_v22  ;;  %v2946_v41 = vld [vmem:[#allocation3 + $0x8] sm:$0xff] }
0x1406   :  { %3751 = vmatprep.subr.mxu1 %v4123_v0  ;;  %3742 = vmatprep.mubr.msk.f32.mxu0 %vm4124_vm0, %v4123_v0 }
0x1407   :  { %3752 = vmatpush3.msra.mxu1 %v3279_v31  ;;  %3753 = vmatprep.mubr.msk.f32.mxu1 %vm4124_vm0, %v4123_v0  ;;  %v2947_v31 = vld [vmem:[#allocation3 + $0x10] sm:$0xff] }
0x1408   :  { %3756 = vmatprep.subr.mxu0 %v2956_v28 }
0x14b8   :  { %v2491_v5 = vpop.f32.mrf.mxu1 }
0x14ba   :  { %v3711_v42 = vpop.f32.mrf.mxu1 }
0x14bd   :  { %v2566_v54 = vpop.f32.mrf.mxu0 }
0x14be   :  { %v2567_v55 = vadd.f32 %v2566_v54, %v2491_v5 }
0x14bf   :  { %v3722_v57 = vpop.f32.mrf.mxu0 }
0x14c0   :  { %v2577_v58 = vadd.f32 %v4756_v44, %v2567_v55  ;;  %v2696_v62 = vpop.f32.mrf.mxu1 }
0x14c1   :  { %v2700_v63 = vadd.f32 %v2696_v62, %v416_v46 }
0x14c2   :  { %3903 = vtanh.f32 %v2577_v58  ;;  %v3733_v52 = vpop.f32.mrf.mxu1  ;;  %v3287_v12 = vmul.f32 -1.442695, %v2577_v58 }
0x14c3   :  { %3905 = vtanh.f32 %v2700_v63  ;;  %v3289_v17 = vmul.f32 -1.442695, %v2700_v63 }
0x14c4   :  { %3907 = vpow2.f32 %v3287_v12 }
0x14c5   :  { %3909 = vpow2.f32 %v3289_v17 }
0x14cf   :  { %v3904_v0 = vpop.eup %3903 }
0x14d0   :  { %v3906_v2 = vpop.eup %3905  ;;  %2591 = vrot.lane.b32.xlu1 %v3904_v0, %s4125_s18 }
0x14d1   :  { %2714 = vrot.lane.b32.xlu0 %v3906_v2, %s4125_s18  ;;  %v3908_v18 = vpop.eup %3907 }
0x14d2   :  { %v3910_v19 = vpop.eup %3909  ;;  %v2581_v56 = vadd.f32 1.0, %v3908_v18 }
0x14d3   :  { %v2704_v7 = vadd.f32 1.0, %v3910_v19 }
0x14d4   :  { %2586 = vrot.lane.b32.xlu1 %v2303_v6, %s4126_s19  ;;  %3911 = vrcp.f32 %v2581_v56 }
0x14d5   :  { %2709 = vrot.lane.b32.xlu0 %v2611_v33, %s4126_s19  ;;  %3913 = vrcp.f32 %v2704_v7 }
0x14e1   :  { %v3912_v59 = vpop.eup %3911 }
0x14e2   :  { %v3914_v10 = vpop.eup %3913 }
0x1542   :  { %v2592_v9 = vpop.permute.xlu1 %2591 }
0x1543   :  { %v2715_v60 = vpop.permute.xlu0 %2714  ;;  %v2594_v11 = vmul.f32 %v3912_v59, %v2592_v9 }
0x1544   :  { %v2717_v13 = vmul.f32 %v3914_v10, %v2715_v60 }
0x1545   :  { %2596 = vrot.lane.b32.xlu1 %v2594_v11, %s4126_s19 }
0x1546   :  { %2719 = vrot.lane.b32.xlu0 %v2717_v13, %s4126_s19  ;;  %v2587_v8 = vpop.permute.xlu1 %2586 }
0x1547   :  { %v2710_v61 = vpop.permute.xlu0 %2709  ;;  %v2589_v14 = vmul.f32 %v3912_v59, %v2587_v8 }
0x1548   :  { %v2712_v23 = vmul.f32 %v3914_v10, %v2710_v61 }
0x15b7   :  { %v2597_v30 = vpop.permute.xlu1 %2596 }
0x15b8   :  { %v2720_v35 = vpop.permute.xlu0 %2719  ;;  %v2599_v36 = vadd.f32 %v2597_v30, %v2589_v14 }
0x15b9   :  { %v4769_v26 = vadd.f32 %v2720_v35, %v2712_v23 }
0x15ba   :  { %3915 = vtanh.f32 %v2599_v36  ;;  %v2612_v25 = vmul.f32 0.5, %v2599_v36 }
0x15bb   :  { %3917 = vtanh.f32 %v4769_v26  ;;  %v2920_v3 = vmul.f32 0.5, %v4769_v26 }
0x15c7   :  { %v3916_v29 = vpop.eup %3915 }
0x15c8   :  { %v3918_v15 = vpop.eup %3917  ;;  %2602 = vrot.lane.b32.xlu1 %v3916_v29, %s4125_s18 }
0x15c9   :  { %2725 = vrot.lane.b32.xlu0 %v3918_v15, %s4125_s18 }
0x163a   :  { %v2603_v16 = vpop.permute.xlu1 %2602 }
0x163b   :  { %v2726_v20 = vpop.permute.xlu0 %2725  ;;  %v2605_v21 = vmul.f32 %v3912_v59, %v2603_v16 }
0x163c   :  { %v2728_v24 = vmul.f32 %v3914_v10, %v2726_v20 }
0x163d   :  { %2619 = vrot.lane.b32.xlu1 %v2605_v21, %s4126_s19 }
0x163e   :  { %2810 = vrot.lane.b32.xlu0 %v2728_v24, %s4126_s19 }
0x1641   :  { %2614 = vrot.lane.b32.xlu1 %v2612_v25, %s4127_s30 }
0x16af   :  { %v2620_v27 = vpop.permute.xlu1 %2619 }
0x16b0   :  { %v2811_v34 = vpop.permute.xlu0 %2810  ;;  %2623 = vst.msk [vmem:[#allocation3 + $0x30] sm:$0xff] %vm289_vm2, %v2620_v27  ;;  %3743 = vmatmul.mubr.msk.f32.vlgmr.msra.gmra.mxu0 %vm289_vm2, %v2620_v27 }
0x16b1   :  { %2939 = vst.msk [vmem:[#allocation14] sm:$0xff] %vm289_vm2, %v2811_v34  ;;  %3754 = vmatmul.mubr.msk.f32.vlgmr.msra.gmra.mxu1 %vm289_vm2, %v2811_v34  ;;  %3757 = vmatpush3.msra.mxu0 %v2956_v28 }
0x16b2   :  { %3758 = vmatprep.subr.mxu0 %v2955_v32  ;;  %3764 = vmatprep.mubr.msk.f32.mxu0 %vm289_vm2, %v2945_v37 }
0x16b3   :  { %3759 = vmatpush3.msra.mxu0 %v2955_v32  ;;  %v2615_v38 = vpop.permute.xlu1 %2614 }
0x16b4   :  { %3760 = vmatprep.subr.mxu0 %v2954_v4  ;;  %v2617_v40 = vadd.f32 %v2615_v38, %v4427_v22 }
0x16b5   :  { %3761 = vmatpush3.msra.mxu0 %v2954_v4 }
0x16b6   :  { %3762 = vmatprep.subr.mxu0 %v2953_v39  ;;  %2900 = vrot.lane.b32.xlu1 %v2617_v40, %s4126_s19 }
0x16b7   :  { %3763 = vmatpush3.msra.mxu0 %v2953_v39  ;;  %v2951_v48 = vld [vmem:[#allocation3 + $0x30] sm:$0xff] }
0x16b8   :  { %3765 = vmatmul.mubr.msk.f32.vlgmr.msra.gmra.mxu0 %vm289_vm2, %v2946_v41 }
0x16b9   :  { %3767 = vmatprep.mubr.msk.f32.mxu0 %vm289_vm2, %v2947_v31 }
0x16bc   :  { %3768 = vmatmul.mubr.msk.f32.gmra.mxu0 %vm289_vm2, %v2948_v43 }
0x16bd   :  { %3770 = vmatprep.mubr.msk.f32.mxu0 %vm289_vm2, %v2949_v45 }
0x16c0   :  { %3771 = vmatmul.mubr.msk.f32.gmra.mxu0 %vm289_vm2, %v2950_v47 }
0x16c1   :  { %3773 = vmatprep.mubr.msk.f32.mxu0 %vm289_vm2, %v2951_v48 }
0x1728   :  { %v2901_v52 = vpop.permute.xlu1 %2900 }
0x1770   :  { %v2805_v49 = vpop.f32.mrf.mxu0 }
0x1771   :  { %v2880_v50 = vpop.f32.mrf.mxu1 }
0x1772   :  { %v2881_v51 = vadd.f32 %v2880_v50, %v2805_v49  ;;  %v3744_v53 = vpop.f32.mrf.mxu0 }
0x1773   :  { %v3755_v5 = vpop.f32.mrf.mxu1 }
0x1774   :  { %v2891_v42 = vadd.f32 %v4756_v44, %v2881_v51 }
0x1776   :  { %3919 = vtanh.f32 %v2891_v42  ;;  %v3298_v55 = vmul.f32 -1.442695, %v2891_v42 }
0x1778   :  { %3921 = vpow2.f32 %v3298_v55 }
0x1783   :  { %v3920_v54 = vpop.eup %3919 }
0x1784   :  { %2905 = vrot.lane.b32.xlu0 %v3920_v54, %s4125_s18 }
0x1785   :  { %v3922_v46 = vpop.eup %3921 }
0x1786   :  { %v2895_v57 = vadd.f32 1.0, %v3922_v46 }
0x1788   :  { %3923 = vrcp.f32 %v2895_v57 }
0x1795   :  { %v3924_v58 = vpop.eup %3923 }
0x1796   :  { %v2903_v0 = vmul.f32 %v3924_v58, %v2901_v52 }
0x17f6   :  { %v2906_v62 = vpop.permute.xlu0 %2905 }
0x17f7   :  { %v2908_v63 = vmul.f32 %v3924_v58, %v2906_v62 }
0x17f9   :  { %2910 = vrot.lane.b32.xlu0 %v2908_v63, %s4126_s19 }
0x186b   :  { %v2911_v1 = vpop.permute.xlu0 %2910 }
0x186c   :  { %v2913_v2 = vadd.f32 %v2911_v1, %v2903_v0 }
0x186e   :  { %3925 = vtanh.f32 %v2913_v2  ;;  %v2926_v17 = vmul.f32 0.5, %v2913_v2 }
0x187b   :  { %v3926_v44 = vpop.eup %3925 }
0x187c   :  { %2916 = vrot.lane.b32.xlu1 %v3926_v44, %s4125_s18  ;;  %s3165_s18 = sshll.u32 %s4128_s9, 4  ;;  %s3166_s18 = int_to_ptr.vmem [resolvable:$true] %s3165_s18 }
0x187d   :  { %p4051_p12 = scmp.lt.s32.totalorder %s3166_s18, %s3166_s18 }
0x1880   :  { %2922 = vrot.lane.b32.xlu1 %v2920_v3, %s4127_s30 }
0x18ee   :  { %v2917_v6 = vpop.permute.xlu1 %2916 }
0x18ef   :  { %v2919_v33 = vmul.f32 %v3924_v58, %v2917_v6 }
0x18f1   :  { %2933 = vrot.lane.b32.xlu0 %v2919_v33, %s4126_s19  ;;  %s4046_s19 = scalar_lea.vmem %s3166_s18, 256 }
0x18f2   :  { %v2923_v12 = vpop.permute.xlu1 %2922  ;;  %p4047_p11 = scmp.ne.s32.totalorder %s3166_s18, %s4046_s19  ;;  %p4052_p13 = scmp.lt.s32.totalorder %s4046_s19, %s4046_s19 }
0x18f3   :  { %v2925_v18 = vadd.f32 %v2923_v12, %v4427_v22 }
0x18f4   :  { %p4053_p0 = por %p4052_p13, %p4051_p12 }
0x18f5   :  { %2940 = vst.msk [vmem:[#allocation16] sm:$0xff] %vm289_vm2, %v2925_v18  ;;  %2928 = vrot.lane.b32.xlu0 %v2926_v17, %s4127_s30 }
0x18f6   :  { %p4054_p1 = pnand %p4053_p0, %p4047_p11 }
0x1963   :  { %v2934_v19 = vpop.permute.xlu0 %2933 }
0x1964   :  { %2937 = vst.msk [vmem:[#allocation3 + $0x38] sm:$0xff] %vm289_vm2, %v2934_v19  ;;  %2942 = vst.msk [vmem:[#allocation14 + $0x8] sm:$0xff] %vm289_vm2, %v2934_v19 }
0x1967   :  { %v2929_v56 = vpop.permute.xlu0 %2928 }
0x1968   :  { %v2931_v7 = vadd.f32 %v2929_v56, %v4427_v22 }
0x196a   :  { %2944 = vst.msk [vmem:[#allocation16 + $0x8] sm:$0xff] %vm289_vm2, %v2931_v7 }
0x196b   :  { %v2952_v59 = vld [vmem:[#allocation3 + $0x38] sm:$0xff] }
0x196c   :  { %3774 = vmatmul.mubr.msk.f32.gmra.mxu0 %vm289_vm2, %v2952_v59 }
0x196d   :  { %4057 = shalt.err (!%p4054_p1)
}
0x196e   :  { %3171 = dma.vmem_to_hbm [thread:$0]  %s3166_s18, 256, %s4850_s12, [#allocation15], %s4119_s3, %s4119_s3, %s4120_s23  }
0x196f   :  { %s4129_s15 = smov [#allocation16]  }
0x1970   :  { %s3177_s16 = sshll.u32 %s4129_s15, 4  ;;  %s3178_s16 = int_to_ptr.vmem [resolvable:$true] %s3177_s16 }
0x1971   :  { %s4066_s4 = scalar_lea.vmem %s3178_s16, 256  ;;  %p4071_p3 = scmp.lt.s32.totalorder %s3178_s16, %s3178_s16 }
0x1972   :  { %p4067_p2 = scmp.ne.s32.totalorder %s3178_s16, %s4066_s4  ;;  %p4072_p4 = scmp.lt.s32.totalorder %s4066_s4, %s4066_s4 }
0x1974   :  { %p4073_p5 = por %p4072_p4, %p4071_p3 }
0x1976   :  { %p4074_p6 = pnand %p4073_p5, %p4067_p2 }
0x1978   :  { %4077 = shalt.err (!%p4074_p6)
}
0x1979   :  { %3183 = dma.vmem_to_hbm [thread:$0]  %s3178_s16, 256, %s4851_s13, [#allocation15], %s4119_s3, %s4119_s3, %s4120_s23   ;;  %v3766_v22 = vpop.f32.mrf.mxu0 }
0x197a   :  { %v3299_v8 = vld [vmem:[%s4848_s10] ss:$0 sm:$0xff]  ;;  %s4130_s10 = smov [#allocation13]  }
0x197b   :  { %v3054_v9 = vpop.f32.mrf.mxu0  ;;  %v3060_v36 = vadd.f32 %v3766_v22, %v3299_v8  ;;  %s3153_s13 = sshll.u32 %s4130_s10, 4  ;;  %s3154_s13 = int_to_ptr.vmem [resolvable:$true] %s3153_s13 }
0x197c   :  { %v3055_v23 = vadd.f32 %v3299_v8, %v3054_v9  ;;  %s4086_s0 = scalar_lea.vmem %s3154_s13, 1024  ;;  %p4091_p8 = scmp.lt.s32.totalorder %s3154_s13, %s3154_s13 }
0x197d   :  { %v3769_v10 = vpop.f32.mrf.mxu0  ;;  %p4087_p7 = scmp.ne.s32.totalorder %s3154_s13, %s4086_s0  ;;  %p4092_p9 = scmp.lt.s32.totalorder %s4086_s0, %s4086_s0 }
0x197e   :  { %v3070_v28 = vadd.f32 %v3769_v10, %v3299_v8 }
0x197f   :  { %v3064_v60 = vpop.f32.mrf.mxu0  ;;  %p4093_p10 = por %p4092_p9, %p4091_p8 }
0x1980   :  { %v3065_v29 = vadd.f32 %v3299_v8, %v3064_v60 }
0x1981   :  { %v3772_v11 = vpop.f32.mrf.mxu0  ;;  %p4094_p11 = pnand %p4093_p10, %p4087_p7 }
0x1982   :  { %v3080_v30 = vadd.f32 %v3772_v11, %v3299_v8 }
0x1983   :  { %v3074_v13 = vpop.f32.mrf.mxu0 }
0x1984   :  { %v3075_v61 = vadd.f32 %v3299_v8, %v3074_v13  ;;  %v3094_v20 = vmax.f32 %v3060_v36, %v3080_v30 }
0x1986   :  { %v3093_v15 = vmax.f32 %v3055_v23, %v3075_v61 }
0x1988   :  { %v3097_v25 = vmax.f32 %v3093_v15, %v3094_v20 }
0x1a2c   :  { %v3775_v14 = vpop.f32.mrf.mxu0 }
0x1a2d   :  { %v3090_v35 = vadd.f32 %v3775_v14, %v3299_v8 }
0x1a2e   :  { %v3084_v26 = vpop.f32.mrf.mxu0 }
0x1a2f   :  { %v3085_v16 = vadd.f32 %v3299_v8, %v3084_v26  ;;  %v3096_v21 = vmax.f32 %v3070_v28, %v3090_v35 }
0x1a31   :  { %v3095_v24 = vmax.f32 %v3065_v29, %v3085_v16 }
0x1a33   :  { %v3098_v27 = vmax.f32 %v3095_v24, %v3096_v21 }
0x1a35   :  { %v3099_v32 = vmax.f32 %v3097_v25, %v3098_v27 }
0x1a37   :  { %v3100_v34 = vsub.f32 %v3055_v23, %v3099_v32  ;;  %v3101_v37 = vsub.f32 %v3060_v36, %v3099_v32  ;;  %v3102_v4 = vsub.f32 %v3065_v29, %v3099_v32  ;;  %v3103_v38 = vsub.f32 %v3070_v28, %v3099_v32 }
0x1a38   :  { %v3104_v41 = vsub.f32 %v3075_v61, %v3099_v32  ;;  %v3105_v43 = vsub.f32 %v3080_v30, %v3099_v32  ;;  %v3106_v47 = vsub.f32 %v3085_v16, %v3099_v32  ;;  %v3107_v49 = vsub.f32 %v3090_v35, %v3099_v32 }
0x1a39   :  { %v3108_v39 = vmul.f32 1.442695, %v3100_v34  ;;  %v3110_v40 = vmul.f32 1.442695, %v3101_v37  ;;  %v3112_v31 = vmul.f32 1.442695, %v3102_v4 }
0x1a3a   :  { %v3114_v45 = vmul.f32 1.442695, %v3103_v38  ;;  %v3116_v48 = vmul.f32 1.442695, %v3104_v41  ;;  %v3118_v50 = vmul.f32 1.442695, %v3105_v43 }
0x1a3b   :  { %3927 = vpow2.f32 %v3108_v39  ;;  %v3120_v51 = vmul.f32 1.442695, %v3106_v47  ;;  %v3122_v53 = vmul.f32 1.442695, %v3107_v49 }
0x1a3c   :  { %3929 = vpow2.f32 %v3110_v40 }
0x1a3d   :  { %3931 = vpow2.f32 %v3112_v31 }
0x1a3e   :  { %3933 = vpow2.f32 %v3114_v45 }
0x1a3f   :  { %3935 = vpow2.f32 %v3116_v48 }
0x1a40   :  { %3937 = vpow2.f32 %v3118_v50 }
0x1a41   :  { %3939 = vpow2.f32 %v3120_v51 }
0x1a42   :  { %3941 = vpow2.f32 %v3122_v53 }
0x1a48   :  { %v3928_v5 = vpop.eup %3927 }
0x1a49   :  { %v3930_v42 = vpop.eup %3929 }
0x1a4a   :  { %v3124_v54 = vadd.f32 %v3930_v42, %v3928_v5  ;;  %v3932_v55 = vpop.eup %3931 }
0x1a4b   :  { %v3934_v57 = vpop.eup %3933 }
0x1a4c   :  { %v3125_v46 = vadd.f32 %v3932_v55, %v3124_v54  ;;  %v3936_v62 = vpop.eup %3935 }
0x1a4d   :  { %v3938_v52 = vpop.eup %3937 }
0x1a4e   :  { %v3126_v58 = vadd.f32 %v3934_v57, %v3125_v46  ;;  %v3940_v1 = vpop.eup %3939 }
0x1a4f   :  { %v3942_v44 = vpop.eup %3941 }
0x1a50   :  { %v3127_v63 = vadd.f32 %v3936_v62, %v3126_v58 }
0x1a52   :  { %v3128_v0 = vadd.f32 %v3938_v52, %v3127_v63 }
0x1a54   :  { %v3129_v2 = vadd.f32 %v3940_v1, %v3128_v0 }
0x1a56   :  { %v3130_v3 = vadd.f32 %v3942_v44, %v3129_v2 }
0x1a58   :  { %3943 = vrcp.f32 %v3130_v3 }
0x1a65   :  { %v3944_v6 = vpop.eup %3943 }
0x1a66   :  { %v3138_v33 = vmul.f32 %v3944_v6, %v3940_v1  ;;  %v3132_v12 = vmul.f32 %v3944_v6, %v3928_v5  ;;  %v3133_v17 = vmul.f32 %v3944_v6, %v3930_v42  ;;  %v3134_v18 = vmul.f32 %v3944_v6, %v3932_v55 }
0x1a67   :  { %v3135_v19 = vmul.f32 %v3944_v6, %v3934_v57  ;;  %v3136_v56 = vmul.f32 %v3944_v6, %v3936_v62  ;;  %v3137_v7 = vmul.f32 %v3944_v6, %v3938_v52  ;;  %v3139_v59 = vmul.f32 %v3944_v6, %v3942_v44 }
0x1a68   :  { %3146 = vst [vmem:[#allocation13 + $0x30] sm:$0xff] %v3138_v33  ;;  %3140 = vst [vmem:[#allocation13] sm:$0xff] %v3132_v12 }
0x1a69   :  { %3141 = vst [vmem:[#allocation13 + $0x8] sm:$0xff] %v3133_v17  ;;  %3142 = vst [vmem:[#allocation13 + $0x10] sm:$0xff] %v3134_v18 }
0x1a6a   :  { %3143 = vst [vmem:[#allocation13 + $0x18] sm:$0xff] %v3135_v19  ;;  %3144 = vst [vmem:[#allocation13 + $0x20] sm:$0xff] %v3136_v56 }
0x1a6b   :  { %3145 = vst [vmem:[#allocation13 + $0x28] sm:$0xff] %v3137_v7  ;;  %3147 = vst [vmem:[#allocation13 + $0x38] sm:$0xff] %v3139_v59 }
0x1a6c   :  { %4097 = shalt.err (!%p4094_p11)
}
0x1a6d   :  { %3159 = dma.vmem_to_hbm [thread:$0]  %s3154_s13, 1024, %s4849_s11, [#allocation6], %s4119_s3, %s4119_s3, %s4120_s23  }
0x1a6e   :  { %4112 = dma.done.wait [#allocation6], 1024  }
0x1a6f   :  { %4113 = vsyncadd [#allocation6], 4294966272 }
0x1a70   :  { %4114 = dma.done.wait [#allocation15], 512  }
0x1a71   :  { %4115 = vsyncadd [#allocation15], 4294966784 }
0x1a72   :  { %3193 = vsyncpa [#allocation5], 1 }
0x1a73   :  { %3194 = vsyncpa [#allocation8], 1 }
0x1a74   :  { %3195 = vsyncpa [#allocation11], 1 }
0x1a75   :  { %3196 = vsyncpa [#allocation6], 1 }
0x1a76   :  { %3197 = vsyncpa [#allocation15], 1 }

</bundles_post_ra>
